<compile_context>
chip_gen: v5e
topology: v5e:2x2
jax: 0.10.0
libtpu: 0.0.40
codegen_flags: <defaults>
</compile_context>

<pallas_src>
import functools

import jax
import jax.numpy as jnp
from jax import lax
from jax.experimental import pallas as pl
from jax.experimental.pallas import tpu as pltpu

EPS = 1e-5
INTERMEDIATE_DTYPE = jnp.bfloat16     # HBM dtype of y1/y2 (stats stay f32)


def _tpu_vmem_bytes():
    try:
        info = pltpu.get_tpu_info()
        cap = getattr(info, "vmem_capacity_bytes", None)
        if cap:
            return int(cap)
    except Exception:
        pass
    return 64 << 20                    # conservative fallback (v7x physical)


_VMEM_BYTES = _tpu_vmem_bytes()                       # 128 MiB v5e/v6e, 64 MiB v7x
_VMEM_LIMIT_BYTES = int(min(_VMEM_BYTES * 3 // 4, 112 << 20))
_BLOCK_BUDGET_BYTES = _VMEM_LIMIT_BYTES // 2          # live (double-buffered) blocks


def _pick_batch_block(n, per_image_bytes, fixed_bytes=0):
    """Largest divisor of n whose per-step blocks fit the VMEM budget, while
    keeping >=2 grid steps so both v7x TensorCores are fed."""
    # TODO(synk): non-divisible batch sizes fall back to smaller divisors; a
    #             masked tail block (pl.BoundedSlice) would allow larger blocks.
    min_steps = 2 if n >= 2 else 1
    best = 1
    for d in range(1, n + 1):
        if n % d:
            continue
        if n // d < min_steps:
            break
        if fixed_bytes + d * per_image_bytes <= _BLOCK_BUDGET_BYTES:
            best = d
    return best


def _tap_masks(ksize, pad, height, width):
    """(K*K, H*W) f32 valid-lane masks for the rolled depthwise taps."""
    s = height * width
    flat = jnp.arange(s, dtype=jnp.int32)
    hh = flat // width
    ww = flat - hh * width
    rows = []
    for kh in range(ksize):
        for kw in range(ksize):
            dh, dw = kh - pad, kw - pad
            m = jnp.ones((s,), jnp.bool_)
            if dh > 0:
                m = m & (hh < height - dh)
            elif dh < 0:
                m = m & (hh >= -dh)
            if dw > 0:
                m = m & (ww < width - dw)
            elif dw < 0:
                m = m & (ww >= -dw)
            rows.append(m)
    return jnp.stack(rows, axis=0).astype(jnp.float32)


# ----------------------------------------------------------------------------
# Kernel A/B: (optional BN-apply) -> ReLU -> depthwise KxK (stride 1, 'same')
# -> 1x1 pointwise, as ONE stacked-tap MXU matmul per image, plus per-step
# BatchNorm statistics of the output.
# ----------------------------------------------------------------------------
def _relu_sepconv_kernel(scale_ref, bias_ref, masks_ref, x_ref, w_ref,
                         y_ref, ssum_ref, ssq_ref, stack_ref,
                         *, ksize, width, pad):
    # scale_ref, bias_ref : (Cin, 1) f32   folded BN applied BEFORE the ReLU
    # masks_ref           : (K*K, S) f32   per-tap valid-lane masks
    # x_ref               : (B_blk, Cin, S)
    # w_ref               : (Cout, K*K*Cin) bf16 combined dw+pw weights
    # y_ref               : (B_blk, Cout, S)
    # ssum_ref, ssq_ref   : (1, 1, Cout)   lane-major per-step statistics
    # stack_ref           : (K*K*Cin, S) f32 VMEM scratch (rolled tap stack)
    bblk, cin, s = x_ref.shape
    cout = y_ref.shape[1]

    scale = scale_ref[...]                       # (Cin, 1), broadcast over lanes
    bias = bias_ref[...]
    masks = masks_ref[...]                       # (K*K, S) f32
    w = w_ref[...]                               # (Cout, K*K*Cin) bf16

    deltas = [(kh - pad) * width + (kw - pad)
              for kh in range(ksize) for kw in range(ksize)]

    def body(b, carry):
        s_sum, s_sq = carry
        xb = x_ref[b].astype(jnp.float32)                    # (Cin, S)
        xb = jnp.maximum(xb * scale + bias, 0.0)             # BN-apply + ReLU, f32
        for t, delta in enumerate(deltas):
            if delta == 0:                                   # centre tap: no mask
                xs = xb
            else:
                # xs[i] = xb[i + delta] for in-bounds lanes (wrap is masked off)
                xs = pltpu.roll(xb, (-delta) % s, axis=1) * masks[t]
            stack_ref[t * cin:(t + 1) * cin, :] = xs
        x_stack = stack_ref[...].astype(jnp.bfloat16)        # (K*K*Cin, S)
        acc = jnp.dot(w, x_stack, preferred_element_type=jnp.float32)
        y_ref[b] = acc.astype(y_ref.dtype)
        s_sum = s_sum + jnp.sum(acc, axis=1)[None, :]
        s_sq = s_sq + jnp.sum(acc * acc, axis=1)[None, :]
        return s_sum, s_sq

    init = (jnp.zeros((1, cout), jnp.float32),
            jnp.zeros((1, cout), jnp.float32))
    s_sum, s_sq = lax.fori_loop(0, bblk, body, init, unroll=(bblk <= 4))
    ssum_ref[0] = s_sum                                      # lane-major store
    ssq_ref[0] = s_sq


# ----------------------------------------------------------------------------
# Kernel C: BatchNorm apply (normalize + affine, folded into scale/bias).
# ----------------------------------------------------------------------------
def _bn_apply_kernel(scale_ref, bias_ref, x_ref, o_ref):
    x = x_ref[...].astype(jnp.float32)
    o_ref[...] = (x * scale_ref[...] + bias_ref[...]).astype(o_ref.dtype)


# ----------------------------------------------------------------------------
# Wrappers
# ----------------------------------------------------------------------------
def relu_sepconv(x, scale, bias, masks, w_stack, ksize, pad, width, out_dtype):
    n, cin, s = x.shape
    cout = w_stack.shape[0]
    kk = ksize * ksize
    in_b = jnp.dtype(x.dtype).itemsize
    out_b = jnp.dtype(out_dtype).itemsize
    per_image = 2 * s * (cin * in_b + cout * out_b)           # double-buffered blocks
    fixed = kk * cin * s * 4 + cout * kk * cin * 2 + kk * s * 4 + cout * s * 4
    bblk = _pick_batch_block(n, per_image, fixed)
    nsteps = n // bblk

    kern = functools.partial(_relu_sepconv_kernel,
                             ksize=ksize, width=width, pad=pad)
    y, ssum, ssq = pl.pallas_call(
        kern,
        out_shape=(
            jax.ShapeDtypeStruct((n, cout, s), out_dtype),
            jax.ShapeDtypeStruct((nsteps, 1, cout), jnp.float32),
            jax.ShapeDtypeStruct((nsteps, 1, cout), jnp.float32),
        ),
        grid=(nsteps,),
        in_specs=[
            pl.BlockSpec((cin, 1), lambda i: (0, 0)),
            pl.BlockSpec((cin, 1), lambda i: (0, 0)),
            pl.BlockSpec((kk, s), lambda i: (0, 0)),
            pl.BlockSpec((bblk, cin, s), lambda i: (i, 0, 0)),
            pl.BlockSpec((cout, kk * cin), lambda i: (0, 0)),
        ],
        out_specs=(
            pl.BlockSpec((bblk, cout, s), lambda i: (i, 0, 0)),
            pl.BlockSpec((1, 1, cout), lambda i: (i, 0, 0)),
            pl.BlockSpec((1, 1, cout), lambda i: (i, 0, 0)),
        ),
        scratch_shapes=[pltpu.VMEM((kk * cin, s), jnp.float32)],
        compiler_params=pltpu.CompilerParams(
            dimension_semantics=("parallel",),
            vmem_limit_bytes=_VMEM_LIMIT_BYTES),
    )(scale, bias, masks, x, w_stack)
    return y, ssum, ssq


def bn_apply(x, scale, bias, out_dtype):
    n, c, s = x.shape
    in_b = jnp.dtype(x.dtype).itemsize
    out_b = jnp.dtype(out_dtype).itemsize
    bblk = _pick_batch_block(n, 2 * c * s * (in_b + out_b))
    alias = {2: 0} if jnp.dtype(x.dtype) == jnp.dtype(out_dtype) else {}
    return pl.pallas_call(
        _bn_apply_kernel,
        out_shape=jax.ShapeDtypeStruct((n, c, s), out_dtype),
        grid=(n // bblk,),
        in_specs=[
            pl.BlockSpec((c, 1), lambda i: (0, 0)),
            pl.BlockSpec((c, 1), lambda i: (0, 0)),
            pl.BlockSpec((bblk, c, s), lambda i: (i, 0, 0)),
        ],
        out_specs=pl.BlockSpec((bblk, c, s), lambda i: (i, 0, 0)),
        input_output_aliases=alias,
        compiler_params=pltpu.CompilerParams(
            dimension_semantics=("parallel",),
            vmem_limit_bytes=_VMEM_LIMIT_BYTES),
    )(scale, bias, x)


def _bn_fold(ssum, ssq, count, gamma, beta):
    # Training-mode BatchNorm (biased variance over N*H*W) folded into a
    # per-channel (scale, bias) pair.  O(C) work in plain XLA.
    # TODO(synk): single-pass E[x^2]-E[x]^2 variance (clamped at 0) can lose
    #             precision for large-mean activations vs a two-pass formula.
    mean = ssum / count
    var = jnp.maximum(ssq / count - mean * mean, 0.0)
    scale = gamma * lax.rsqrt(var + EPS)
    bias = beta - mean * scale
    return scale.reshape(-1, 1), bias.reshape(-1, 1)


def sepconv_forward(x_nchw, params, kernel_size, stride, padding):
    # DARTS SepConv always uses 'same' padding: p = (K-1)//2.
    assert 2 * padding == kernel_size - 1, "kernel assumes 'same' padding"
    n, cin, h, w = x_nchw.shape
    cout = params["w2"].shape[0]
    x = x_nchw.reshape(n, cin, h * w)                # free reshape, no transpose

    ident_s = jnp.ones((cin, 1), jnp.float32)
    ident_b = jnp.zeros((cin, 1), jnp.float32)
    masks = _tap_masks(kernel_size, padding, h, w)

    # ---- op: ReLU -> dw KxK (stride s) -> 1x1 ------------------------------
    y1, ssum1, ssq1 = relu_sepconv(x, ident_s, ident_b, masks, params["w1"],
                                   kernel_size, padding, w, INTERMEDIATE_DTYPE)
    if stride > 1:
        # TODO(synk): stride>1 decimates the stride-1 output in XLA (correct,
        #             but ~stride^2 extra conv work + one extra HBM pass); an
        #             in-kernel strided/compacted output would remove this.
        y1 = y1.reshape(n, cin, h, w)[:, :, ::stride, ::stride]
        ho, wo = y1.shape[2], y1.shape[3]
        y1 = y1.reshape(n, cin, ho * wo)
        y1f = y1.astype(jnp.float32)
        ssum1 = jnp.sum(y1f, axis=(0, 2))
        ssq1 = jnp.sum(y1f * y1f, axis=(0, 2))
        masks = _tap_masks(kernel_size, padding, ho, wo)
    else:
        ho, wo = h, w
        ssum1 = jnp.sum(ssum1, axis=(0, 1))
        ssq1 = jnp.sum(ssq1, axis=(0, 1))

    # ---- bn1 (folded into the stage-2 prologue) ----------------------------
    scale1, bias1 = _bn_fold(ssum1, ssq1, n * ho * wo, params["g1"], params["b1"])

    # ---- op2: bn1-apply -> ReLU -> dw KxK (stride 1) -> 1x1 ----------------
    y2, ssum2, ssq2 = relu_sepconv(y1, scale1, bias1, masks, params["w2"],
                                   kernel_size, padding, wo, INTERMEDIATE_DTYPE)
    scale2, bias2 = _bn_fold(jnp.sum(ssum2, axis=(0, 1)),
                             jnp.sum(ssq2, axis=(0, 1)),
                             n * ho * wo, params["g2"], params["b2"])

    # ---- bn2 ----------------------------------------------------------------
    out = bn_apply(y2, scale2, bias2, x_nchw.dtype)
    return out.reshape(n, cout, ho, wo)


def prepare_params(pt, kernel_size):
    """Convert PyTorch-layout SepConv params to kernel layout.

    The depthwise KxK and 1x1 convs fold into a stacked weight used in one
    (Cout, K*K*Cin) @ (K*K*Cin, S) matmul:
        w[o, t*Cin + c] = pw[o, c] * dw[c, kh, kw],   t = kh*K + kw.
    Stored in bf16 (MXU operand dtype); BN parameters stay f32.
    """
    k = kernel_size

    def combine(dw_pt, pw_pt):
        dw = dw_pt[:, 0].reshape(dw_pt.shape[0], k * k)      # (Cin, K*K)
        pw = pw_pt[:, :, 0, 0]                               # (Cout, Cin)
        wt = pw[:, None, :] * dw.T[None, :, :]               # (Cout, K*K, Cin)
        return wt.reshape(pw.shape[0], k * k * pw.shape[1]).astype(jnp.bfloat16)

    return {
        "w1": combine(pt["dw1"], pt["pw1"]),
        "w2": combine(pt["dw2"], pt["pw2"]),
        "g1": pt["g1"], "b1": pt["b1"],
        "g2": pt["g2"], "b2": pt["b2"],
    }


# ----------------------------------------------------------------------------
# Pure-JAX reference (NCHW, lax.conv) for verification.
# ----------------------------------------------------------------------------
def ref_forward(x, pt, cin, kernel_size, stride, padding):
    prec = lax.Precision.HIGHEST

    def bn(v, g, b):
        mean = jnp.mean(v, axis=(0, 2, 3), keepdims=True)
        var = jnp.mean((v - mean) ** 2, axis=(0, 2, 3), keepdims=True)
        return (v - mean) * lax.rsqrt(var + EPS) * g.reshape(1, -1, 1, 1) \
            + b.reshape(1, -1, 1, 1)

    def dw(v, w, s):
        return lax.conv_general_dilated(
            v, w, window_strides=(s, s), padding=[(padding, padding)] * 2,
            feature_group_count=cin, dimension_numbers=("NCHW", "OIHW", "NCHW"),
            precision=prec)

    def pw(v, w):
        return lax.conv_general_dilated(
            v, w, window_strides=(1, 1), padding="VALID",
            dimension_numbers=("NCHW", "OIHW", "NCHW"), precision=prec)

    out = pw(dw(jax.nn.relu(x), pt["dw1"], stride), pt["pw1"])
    out = bn(out, pt["g1"], pt["b1"])
    out = pw(dw(jax.nn.relu(out), pt["dw2"], 1), pt["pw2"])
    out = bn(out, pt["g2"], pt["b2"])
    return out


if __name__ == "__main__":
    # TODO(synk): forward_wsbn / WSBNFull branch (wsbn_num_inputs > 0) not
    #             implemented; BatchNorm running-statistic buffers are not
    #             updated (stateless training-mode statistics only).
    N, C_IN, C_OUT, H, W = 2, 4, 8, 16, 16
    K, STRIDE, PAD = 3, 1, 1

    key = jax.random.PRNGKey(0)
    kx, k1, k2, k3, k4, k5, k6, k7, k8 = jax.random.split(key, 9)

    x = jax.random.normal(kx, (N, C_IN, H, W), jnp.float32)

    # Parameters in PyTorch layouts (deterministic synthetic init).
    pt = {
        "dw1": 0.2 * jax.random.normal(k1, (C_IN, 1, K, K), jnp.float32),      # depthwise, groups=C_in
        "pw1": 0.2 * jax.random.normal(k2, (C_IN, C_IN, 1, 1), jnp.float32),   # 1x1, C_in->C_in
        "dw2": 0.2 * jax.random.normal(k3, (C_IN, 1, K, K), jnp.float32),
        "pw2": 0.2 * jax.random.normal(k4, (C_OUT, C_IN, 1, 1), jnp.float32),  # 1x1, C_in->C_out
        "g1": 1.0 + 0.1 * jax.random.normal(k5, (C_IN,), jnp.float32),
        "b1": 0.1 * jax.random.normal(k6, (C_IN,), jnp.float32),
        "g2": 1.0 + 0.1 * jax.random.normal(k7, (C_OUT,), jnp.float32),
        "b2": 0.1 * jax.random.normal(k8, (C_OUT,), jnp.float32),
    }

    params = prepare_params(pt, K)

    fwd = jax.jit(lambda v: sepconv_forward(v, params, K, STRIDE, PAD))
    out = jax.block_until_ready(fwd(x))

    ref = jax.block_until_ready(ref_forward(x, pt, C_IN, K, STRIDE, PAD))

    assert out.shape == (N, C_OUT, H, W), out.shape
    assert bool(jnp.all(jnp.isfinite(out)))
    # bf16 matmul operands + bf16 y1/y2 intermediates vs an f32 HIGHEST
    # reference on BN-normalized (unit-variance) outputs.
    err = float(jnp.max(jnp.abs(out - ref)))
    mae = float(jnp.mean(jnp.abs(out - ref)))
    assert err < 1e-1, (err, mae)
    assert mae < 2.5e-2, (err, mae)

    print("KERNEL_OK")
</pallas_src>

<mosaic_0001>
module attributes {stable_mosaic.version = 11 : i64} {
  func.func @_relu_sepconv_kernel(%arg0: i32, %arg1: memref<4x1xf32, #tpu.memory_space<vmem>>, %arg2: memref<4x1xf32, #tpu.memory_space<vmem>>, %arg3: memref<9x256xf32, #tpu.memory_space<vmem>>, %arg4: memref<1x4x256xf32, #tpu.memory_space<vmem>>, %arg5: memref<4x36xbf16, #tpu.memory_space<vmem>>, %arg6: memref<1x4x256xbf16, #tpu.memory_space<vmem>>, %arg7: memref<1x1x4xf32, #tpu.memory_space<vmem>>, %arg8: memref<1x1x4xf32, #tpu.memory_space<vmem>>, %arg9: memref<36x256xf32, #tpu.memory_space<vmem>>) attributes {dimension_semantics = [#tpu.dimension_semantics<parallel>], iteration_bounds = array<i64: 2>, scalar_prefetch = 0 : i64, scratch_operands = 1 : i64, tpu.core_type = #tpu.core_type<tc>, window_params = [{pipeline_mode = #tpu.pipeline_mode<synchronous>, transform_indices = @transform_0, window_bounds = array<i64: 4, 1>}, {pipeline_mode = #tpu.pipeline_mode<synchronous>, transform_indices = @transform_1, window_bounds = array<i64: 4, 1>}, {pipeline_mode = #tpu.pipeline_mode<synchronous>, transform_indices = @transform_2, window_bounds = array<i64: 9, 256>}, {transform_indices = @transform_3, window_bounds = array<i64: 1, 4, 256>}, {pipeline_mode = #tpu.pipeline_mode<synchronous>, transform_indices = @transform_4, window_bounds = array<i64: 4, 36>}, {transform_indices = @transform_5, window_bounds = array<i64: 1, 4, 256>}, {transform_indices = @transform_6, window_bounds = array<i64: 1, 1, 4>}, {transform_indices = @transform_7, window_bounds = array<i64: 1, 1, 4>}]} {
    %c0 = arith.constant 0 : index
    %c0_0 = arith.constant 0 : index
    %0 = vector.load %arg1[%c0, %c0_0] : memref<4x1xf32, #tpu.memory_space<vmem>>, vector<4x1xf32>
    %c0_1 = arith.constant 0 : index
    %c0_2 = arith.constant 0 : index
    %1 = vector.load %arg2[%c0_1, %c0_2] : memref<4x1xf32, #tpu.memory_space<vmem>>, vector<4x1xf32>
    %c0_3 = arith.constant 0 : index
    %c0_4 = arith.constant 0 : index
    %2 = vector.load %arg3[%c0_3, %c0_4] : memref<9x256xf32, #tpu.memory_space<vmem>>, vector<9x256xf32>
    %c0_5 = arith.constant 0 : index
    %c0_6 = arith.constant 0 : index
    %3 = vector.load %arg5[%c0_5, %c0_6] : memref<4x36xbf16, #tpu.memory_space<vmem>>, vector<4x36xbf16>
    %cst = arith.constant 0.000000e+00 : f32
    %4 = vector.broadcast %cst : f32 to vector<1x4xf32>
    %cst_7 = arith.constant 0.000000e+00 : f32
    %5 = vector.broadcast %cst_7 : f32 to vector<1x4xf32>
    %c0_i32 = arith.constant 0 : i32
    %6 = arith.index_cast %c0_i32 : i32 to index
    %c0_8 = arith.constant 0 : index
    %c0_9 = arith.constant 0 : index
    %7 = vector.load %arg4[%6, %c0_8, %c0_9] : memref<1x4x256xf32, #tpu.memory_space<vmem>>, vector<1x4x256xf32>
    %8 = vector.shape_cast %7 : vector<1x4x256xf32> to vector<4x256xf32>
    %9 = vector.broadcast %0 : vector<4x1xf32> to vector<4x256xf32>
    %10 = arith.mulf %8, %9 : vector<4x256xf32>
    %11 = vector.broadcast %1 : vector<4x1xf32> to vector<4x256xf32>
    %12 = arith.addf %10, %11 : vector<4x256xf32>
    %cst_10 = arith.constant 0.000000e+00 : f32
    %13 = vector.broadcast %cst_10 : f32 to vector<4x256xf32>
    %14 = arith.maximumf %12, %13 : vector<4x256xf32>
    %c17_i32 = arith.constant 17 : i32
    %15 = tpu.dynamic_rotate %14 by %c17_i32 dim 1 : vector<4x256xf32>, i32 -> vector<4x256xf32>
    %16 = vector.extract_strided_slice %2 {offsets = [0, 0], sizes = [1, 256], strides = [1, 1]} : vector<9x256xf32> to vector<1x256xf32>
    %17 = vector.shape_cast %16 : vector<1x256xf32> to vector<256xf32>
    %18 = vector.shape_cast %17 : vector<256xf32> to vector<1x256xf32>
    %19 = vector.broadcast %18 : vector<1x256xf32> to vector<4x256xf32>
    %20 = arith.mulf %15, %19 : vector<4x256xf32>
    %c0_11 = arith.constant 0 : index
    %c0_12 = arith.constant 0 : index
    %21 = vector.load %arg9[%c0_11, %c0_12] : memref<36x256xf32, #tpu.memory_space<vmem>>, vector<4x256xf32>
    tpu.vector_store %arg9[%c0_11, %c0_12], %20 {strides = array<i32>} : memref<36x256xf32, #tpu.memory_space<vmem>>, vector<4x256xf32>,
    %c16_i32 = arith.constant 16 : i32
    %22 = tpu.dynamic_rotate %14 by %c16_i32 dim 1 : vector<4x256xf32>, i32 -> vector<4x256xf32>
    %23 = vector.extract_strided_slice %2 {offsets = [1, 0], sizes = [1, 256], strides = [1, 1]} : vector<9x256xf32> to vector<1x256xf32>
    %24 = vector.shape_cast %23 : vector<1x256xf32> to vector<256xf32>
    %25 = vector.shape_cast %24 : vector<256xf32> to vector<1x256xf32>
    %26 = vector.broadcast %25 : vector<1x256xf32> to vector<4x256xf32>
    %27 = arith.mulf %22, %26 : vector<4x256xf32>
    %c4 = arith.constant 4 : index
    %c0_13 = arith.constant 0 : index
    %28 = vector.load %arg9[%c4, %c0_13] : memref<36x256xf32, #tpu.memory_space<vmem>>, vector<4x256xf32>
    tpu.vector_store %arg9[%c4, %c0_13], %27 {strides = array<i32>} : memref<36x256xf32, #tpu.memory_space<vmem>>, vector<4x256xf32>,
    %c15_i32 = arith.constant 15 : i32
    %29 = tpu.dynamic_rotate %14 by %c15_i32 dim 1 : vector<4x256xf32>, i32 -> vector<4x256xf32>
    %30 = vector.extract_strided_slice %2 {offsets = [2, 0], sizes = [1, 256], strides = [1, 1]} : vector<9x256xf32> to vector<1x256xf32>
    %31 = vector.shape_cast %30 : vector<1x256xf32> to vector<256xf32>
    %32 = vector.shape_cast %31 : vector<256xf32> to vector<1x256xf32>
    %33 = vector.broadcast %32 : vector<1x256xf32> to vector<4x256xf32>
    %34 = arith.mulf %29, %33 : vector<4x256xf32>
    %c8 = arith.constant 8 : index
    %c0_14 = arith.constant 0 : index
    %35 = vector.load %arg9[%c8, %c0_14] : memref<36x256xf32, #tpu.memory_space<vmem>>, vector<4x256xf32>
    tpu.vector_store %arg9[%c8, %c0_14], %34 {strides = array<i32>} : memref<36x256xf32, #tpu.memory_space<vmem>>, vector<4x256xf32>,
    %c1_i32 = arith.constant 1 : i32
    %36 = tpu.dynamic_rotate %14 by %c1_i32 dim 1 : vector<4x256xf32>, i32 -> vector<4x256xf32>
    %37 = vector.extract_strided_slice %2 {offsets = [3, 0], sizes = [1, 256], strides = [1, 1]} : vector<9x256xf32> to vector<1x256xf32>
    %38 = vector.shape_cast %37 : vector<1x256xf32> to vector<256xf32>
    %39 = vector.shape_cast %38 : vector<256xf32> to vector<1x256xf32>
    %40 = vector.broadcast %39 : vector<1x256xf32> to vector<4x256xf32>
    %41 = arith.mulf %36, %40 : vector<4x256xf32>
    %c12 = arith.constant 12 : index
    %c0_15 = arith.constant 0 : index
    %42 = vector.load %arg9[%c12, %c0_15] : memref<36x256xf32, #tpu.memory_space<vmem>>, vector<4x256xf32>
    tpu.vector_store %arg9[%c12, %c0_15], %41 {strides = array<i32>} : memref<36x256xf32, #tpu.memory_space<vmem>>, vector<4x256xf32>,
    %c16 = arith.constant 16 : index
    %c0_16 = arith.constant 0 : index
    %43 = vector.load %arg9[%c16, %c0_16] : memref<36x256xf32, #tpu.memory_space<vmem>>, vector<4x256xf32>
    tpu.vector_store %arg9[%c16, %c0_16], %14 {strides = array<i32>} : memref<36x256xf32, #tpu.memory_space<vmem>>, vector<4x256xf32>,
    %c255_i32 = arith.constant 255 : i32
    %44 = tpu.dynamic_rotate %14 by %c255_i32 dim 1 : vector<4x256xf32>, i32 -> vector<4x256xf32>
    %45 = vector.extract_strided_slice %2 {offsets = [5, 0], sizes = [1, 256], strides = [1, 1]} : vector<9x256xf32> to vector<1x256xf32>
    %46 = vector.shape_cast %45 : vector<1x256xf32> to vector<256xf32>
    %47 = vector.shape_cast %46 : vector<256xf32> to vector<1x256xf32>
    %48 = vector.broadcast %47 : vector<1x256xf32> to vector<4x256xf32>
    %49 = arith.mulf %44, %48 : vector<4x256xf32>
    %c20 = arith.constant 20 : index
    %c0_17 = arith.constant 0 : index
    %50 = vector.load %arg9[%c20, %c0_17] : memref<36x256xf32, #tpu.memory_space<vmem>>, vector<4x256xf32>
    tpu.vector_store %arg9[%c20, %c0_17], %49 {strides = array<i32>} : memref<36x256xf32, #tpu.memory_space<vmem>>, vector<4x256xf32>,
    %c241_i32 = arith.constant 241 : i32
    %51 = tpu.dynamic_rotate %14 by %c241_i32 dim 1 : vector<4x256xf32>, i32 -> vector<4x256xf32>
    %52 = vector.extract_strided_slice %2 {offsets = [6, 0], sizes = [1, 256], strides = [1, 1]} : vector<9x256xf32> to vector<1x256xf32>
    %53 = vector.shape_cast %52 : vector<1x256xf32> to vector<256xf32>
    %54 = vector.shape_cast %53 : vector<256xf32> to vector<1x256xf32>
    %55 = vector.broadcast %54 : vector<1x256xf32> to vector<4x256xf32>
    %56 = arith.mulf %51, %55 : vector<4x256xf32>
    %c24 = arith.constant 24 : index
    %c0_18 = arith.constant 0 : index
    %57 = vector.load %arg9[%c24, %c0_18] : memref<36x256xf32, #tpu.memory_space<vmem>>, vector<4x256xf32>
    tpu.vector_store %arg9[%c24, %c0_18], %56 {strides = array<i32>} : memref<36x256xf32, #tpu.memory_space<vmem>>, vector<4x256xf32>,
    %c240_i32 = arith.constant 240 : i32
    %58 = tpu.dynamic_rotate %14 by %c240_i32 dim 1 : vector<4x256xf32>, i32 -> vector<4x256xf32>
    %59 = vector.extract_strided_slice %2 {offsets = [7, 0], sizes = [1, 256], strides = [1, 1]} : vector<9x256xf32> to vector<1x256xf32>
    %60 = vector.shape_cast %59 : vector<1x256xf32> to vector<256xf32>
    %61 = vector.shape_cast %60 : vector<256xf32> to vector<1x256xf32>
    %62 = vector.broadcast %61 : vector<1x256xf32> to vector<4x256xf32>
    %63 = arith.mulf %58, %62 : vector<4x256xf32>
    %c28 = arith.constant 28 : index
    %c0_19 = arith.constant 0 : index
    %64 = vector.load %arg9[%c28, %c0_19] : memref<36x256xf32, #tpu.memory_space<vmem>>, vector<4x256xf32>
    tpu.vector_store %arg9[%c28, %c0_19], %63 {strides = array<i32>} : memref<36x256xf32, #tpu.memory_space<vmem>>, vector<4x256xf32>,
    %c239_i32 = arith.constant 239 : i32
    %65 = tpu.dynamic_rotate %14 by %c239_i32 dim 1 : vector<4x256xf32>, i32 -> vector<4x256xf32>
    %66 = vector.extract_strided_slice %2 {offsets = [8, 0], sizes = [1, 256], strides = [1, 1]} : vector<9x256xf32> to vector<1x256xf32>
    %67 = vector.shape_cast %66 : vector<1x256xf32> to vector<256xf32>
    %68 = vector.shape_cast %67 : vector<256xf32> to vector<1x256xf32>
    %69 = vector.broadcast %68 : vector<1x256xf32> to vector<4x256xf32>
    %70 = arith.mulf %65, %69 : vector<4x256xf32>
    %c32 = arith.constant 32 : index
    %c0_20 = arith.constant 0 : index
    %71 = vector.load %arg9[%c32, %c0_20] : memref<36x256xf32, #tpu.memory_space<vmem>>, vector<4x256xf32>
    tpu.vector_store %arg9[%c32, %c0_20], %70 {strides = array<i32>} : memref<36x256xf32, #tpu.memory_space<vmem>>, vector<4x256xf32>,
    %c0_21 = arith.constant 0 : index
    %c0_22 = arith.constant 0 : index
    %72 = vector.load %arg9[%c0_21, %c0_22] : memref<36x256xf32, #tpu.memory_space<vmem>>, vector<36x256xf32>
    %73 = arith.truncf %72 : vector<36x256xf32> to vector<36x256xbf16>
    %cst_23 = arith.constant dense<0.000000e+00> : vector<4x256xf32>
    %74 = tpu.matmul %3, %73, %cst_23 {dimension_numbers = #tpu.dot_dimension_numbers<[1], [0], [0], [1], [0, 0, 1, 1], [], []>} : vector<4x36xbf16>, vector<36x256xbf16>, vector<4x256xf32> -> vector<4x256xf32>
    %75 = arith.truncf %74 : vector<4x256xf32> to vector<4x256xbf16>
    %76 = arith.index_cast %c0_i32 : i32 to index
    %c0_24 = arith.constant 0 : index
    %c0_25 = arith.constant 0 : index
    %77 = vector.load %arg6[%76, %c0_24, %c0_25] : memref<1x4x256xbf16, #tpu.memory_space<vmem>>, vector<1x4x256xbf16>
    %78 = vector.shape_cast %77 : vector<1x4x256xbf16> to vector<4x256xbf16>
    %79 = vector.shape_cast %75 : vector<4x256xbf16> to vector<1x4x256xbf16>
    tpu.vector_store %arg6[%76, %c0_24, %c0_25], %79 {strides = array<i32>} : memref<1x4x256xbf16, #tpu.memory_space<vmem>>, vector<1x4x256xbf16>,
    %cst_26 = arith.constant dense<0.000000e+00> : vector<4xf32>
    %80 = vector.multi_reduction <add>, %74, %cst_26 [1] : vector<4x256xf32> to vector<4xf32>
    %81 = vector.shape_cast %80 : vector<4xf32> to vector<1x4xf32>
    %82 = arith.addf %4, %81 : vector<1x4xf32>
    %83 = arith.mulf %74, %74 : vector<4x256xf32>
    %cst_27 = arith.constant dense<0.000000e+00> : vector<4xf32>
    %84 = vector.multi_reduction <add>, %83, %cst_27 [1] : vector<4x256xf32> to vector<4xf32>
    %85 = vector.shape_cast %84 : vector<4xf32> to vector<1x4xf32>
    %86 = arith.addf %5, %85 : vector<1x4xf32>
    %c1_i32_28 = arith.constant 1 : i32
    %c0_29 = arith.constant 0 : index
    %c0_30 = arith.constant 0 : index
    %c0_31 = arith.constant 0 : index
    %87 = vector.load %arg7[%c0_29, %c0_30, %c0_31] : memref<1x1x4xf32, #tpu.memory_space<vmem>>, vector<1x1x4xf32>
    %88 = vector.shape_cast %87 : vector<1x1x4xf32> to vector<1x4xf32>
    %89 = vector.shape_cast %82 : vector<1x4xf32> to vector<1x1x4xf32>
    tpu.vector_store %arg7[%c0_29, %c0_30, %c0_31], %89 {strides = array<i32>} : memref<1x1x4xf32, #tpu.memory_space<vmem>>, vector<1x1x4xf32>,
    %c0_32 = arith.constant 0 : index
    %c0_33 = arith.constant 0 : index
    %c0_34 = arith.constant 0 : index
    %90 = vector.load %arg8[%c0_32, %c0_33, %c0_34] : memref<1x1x4xf32, #tpu.memory_space<vmem>>, vector<1x1x4xf32>
    %91 = vector.shape_cast %90 : vector<1x1x4xf32> to vector<1x4xf32>
    %92 = vector.shape_cast %86 : vector<1x4xf32> to vector<1x1x4xf32>
    tpu.vector_store %arg8[%c0_32, %c0_33, %c0_34], %92 {strides = array<i32>} : memref<1x1x4xf32, #tpu.memory_space<vmem>>, vector<1x1x4xf32>,
    return
  }
  func.func @transform_0(%arg0: i32) -> (i32, i32) {
    %c0_i32 = arith.constant 0 : i32
    %c0_i32_0 = arith.constant 0 : i32
    %c0_i32_1 = arith.constant 0 : i32
    return %c0_i32, %c0_i32_0 : i32, i32
  }
  func.func @transform_1(%arg0: i32) -> (i32, i32) {
    %c0_i32 = arith.constant 0 : i32
    %c0_i32_0 = arith.constant 0 : i32
    %c0_i32_1 = arith.constant 0 : i32
    return %c0_i32, %c0_i32_0 : i32, i32
  }
  func.func @transform_2(%arg0: i32) -> (i32, i32) {
    %c0_i32 = arith.constant 0 : i32
    %c0_i32_0 = arith.constant 0 : i32
    %c0_i32_1 = arith.constant 0 : i32
    return %c0_i32, %c0_i32_0 : i32, i32
  }
  func.func @transform_3(%arg0: i32) -> (i32, i32, i32) {
    %c0_i32 = arith.constant 0 : i32
    %c0_i32_0 = arith.constant 0 : i32
    %c0_i32_1 = arith.constant 0 : i32
    return %arg0, %c0_i32, %c0_i32_0 : i32, i32, i32
  }
  func.func @transform_4(%arg0: i32) -> (i32, i32) {
    %c0_i32 = arith.constant 0 : i32
    %c0_i32_0 = arith.constant 0 : i32
    %c0_i32_1 = arith.constant 0 : i32
    return %c0_i32, %c0_i32_0 : i32, i32
  }
  func.func @transform_5(%arg0: i32) -> (i32, i32, i32) {
    %c0_i32 = arith.constant 0 : i32
    %c0_i32_0 = arith.constant 0 : i32
    %c0_i32_1 = arith.constant 0 : i32
    return %arg0, %c0_i32, %c0_i32_0 : i32, i32, i32
  }
  func.func @transform_6(%arg0: i32) -> (i32, i32, i32) {
    %c0_i32 = arith.constant 0 : i32
    %c0_i32_0 = arith.constant 0 : i32
    %c0_i32_1 = arith.constant 0 : i32
    return %arg0, %c0_i32, %c0_i32_0 : i32, i32, i32
  }
  func.func @transform_7(%arg0: i32) -> (i32, i32, i32) {
    %c0_i32 = arith.constant 0 : i32
    %c0_i32_0 = arith.constant 0 : i32
    %c0_i32_1 = arith.constant 0 : i32
    return %arg0, %c0_i32, %c0_i32_0 : i32, i32, i32
  }
}

module attributes {stable_mosaic.version = 11 : i64} {
  func.func @_relu_sepconv_kernel(%arg0: i32, %arg1: memref<4x1xf32, #tpu.memory_space<vmem>>, %arg2: memref<4x1xf32, #tpu.memory_space<vmem>>, %arg3: memref<9x256xf32, #tpu.memory_space<vmem>>, %arg4: memref<1x4x256xbf16, #tpu.memory_space<vmem>>, %arg5: memref<8x36xbf16, #tpu.memory_space<vmem>>, %arg6: memref<1x8x256xbf16, #tpu.memory_space<vmem>>, %arg7: memref<1x1x8xf32, #tpu.memory_space<vmem>>, %arg8: memref<1x1x8xf32, #tpu.memory_space<vmem>>, %arg9: memref<36x256xf32, #tpu.memory_space<vmem>>) attributes {dimension_semantics = [#tpu.dimension_semantics<parallel>], iteration_bounds = array<i64: 2>, scalar_prefetch = 0 : i64, scratch_operands = 1 : i64, tpu.core_type = #tpu.core_type<tc>, window_params = [{pipeline_mode = #tpu.pipeline_mode<synchronous>, transform_indices = @transform_0, window_bounds = array<i64: 4, 1>}, {pipeline_mode = #tpu.pipeline_mode<synchronous>, transform_indices = @transform_1, window_bounds = array<i64: 4, 1>}, {pipeline_mode = #tpu.pipeline_mode<synchronous>, transform_indices = @transform_2, window_bounds = array<i64: 9, 256>}, {transform_indices = @transform_3, window_bounds = array<i64: 1, 4, 256>}, {pipeline_mode = #tpu.pipeline_mode<synchronous>, transform_indices = @transform_4, window_bounds = array<i64: 8, 36>}, {transform_indices = @transform_5, window_bounds = array<i64: 1, 8, 256>}, {transform_indices = @transform_6, window_bounds = array<i64: 1, 1, 8>}, {transform_indices = @transform_7, window_bounds = array<i64: 1, 1, 8>}]} {
    %c0 = arith.constant 0 : index
    %c0_0 = arith.constant 0 : index
    %0 = vector.load %arg1[%c0, %c0_0] : memref<4x1xf32, #tpu.memory_space<vmem>>, vector<4x1xf32>
    %c0_1 = arith.constant 0 : index
    %c0_2 = arith.constant 0 : index
    %1 = vector.load %arg2[%c0_1, %c0_2] : memref<4x1xf32, #tpu.memory_space<vmem>>, vector<4x1xf32>
    %c0_3 = arith.constant 0 : index
    %c0_4 = arith.constant 0 : index
    %2 = vector.load %arg3[%c0_3, %c0_4] : memref<9x256xf32, #tpu.memory_space<vmem>>, vector<9x256xf32>
    %c0_5 = arith.constant 0 : index
    %c0_6 = arith.constant 0 : index
    %3 = vector.load %arg5[%c0_5, %c0_6] : memref<8x36xbf16, #tpu.memory_space<vmem>>, vector<8x36xbf16>
    %cst = arith.constant 0.000000e+00 : f32
    %4 = vector.broadcast %cst : f32 to vector<1x8xf32>
    %cst_7 = arith.constant 0.000000e+00 : f32
    %5 = vector.broadcast %cst_7 : f32 to vector<1x8xf32>
    %c0_i32 = arith.constant 0 : i32
    %6 = arith.index_cast %c0_i32 : i32 to index
    %c0_8 = arith.constant 0 : index
    %c0_9 = arith.constant 0 : index
    %7 = vector.load %arg4[%6, %c0_8, %c0_9] : memref<1x4x256xbf16, #tpu.memory_space<vmem>>, vector<1x4x256xbf16>
    %8 = vector.shape_cast %7 : vector<1x4x256xbf16> to vector<4x256xbf16>
    %9 = arith.extf %8 : vector<4x256xbf16> to vector<4x256xf32>
    %10 = vector.broadcast %0 : vector<4x1xf32> to vector<4x256xf32>
    %11 = arith.mulf %9, %10 : vector<4x256xf32>
    %12 = vector.broadcast %1 : vector<4x1xf32> to vector<4x256xf32>
    %13 = arith.addf %11, %12 : vector<4x256xf32>
    %cst_10 = arith.constant 0.000000e+00 : f32
    %14 = vector.broadcast %cst_10 : f32 to vector<4x256xf32>
    %15 = arith.maximumf %13, %14 : vector<4x256xf32>
    %c17_i32 = arith.constant 17 : i32
    %16 = tpu.dynamic_rotate %15 by %c17_i32 dim 1 : vector<4x256xf32>, i32 -> vector<4x256xf32>
    %17 = vector.extract_strided_slice %2 {offsets = [0, 0], sizes = [1, 256], strides = [1, 1]} : vector<9x256xf32> to vector<1x256xf32>
    %18 = vector.shape_cast %17 : vector<1x256xf32> to vector<256xf32>
    %19 = vector.shape_cast %18 : vector<256xf32> to vector<1x256xf32>
    %20 = vector.broadcast %19 : vector<1x256xf32> to vector<4x256xf32>
    %21 = arith.mulf %16, %20 : vector<4x256xf32>
    %c0_11 = arith.constant 0 : index
    %c0_12 = arith.constant 0 : index
    %22 = vector.load %arg9[%c0_11, %c0_12] : memref<36x256xf32, #tpu.memory_space<vmem>>, vector<4x256xf32>
    tpu.vector_store %arg9[%c0_11, %c0_12], %21 {strides = array<i32>} : memref<36x256xf32, #tpu.memory_space<vmem>>, vector<4x256xf32>,
    %c16_i32 = arith.constant 16 : i32
    %23 = tpu.dynamic_rotate %15 by %c16_i32 dim 1 : vector<4x256xf32>, i32 -> vector<4x256xf32>
    %24 = vector.extract_strided_slice %2 {offsets = [1, 0], sizes = [1, 256], strides = [1, 1]} : vector<9x256xf32> to vector<1x256xf32>
    %25 = vector.shape_cast %24 : vector<1x256xf32> to vector<256xf32>
    %26 = vector.shape_cast %25 : vector<256xf32> to vector<1x256xf32>
    %27 = vector.broadcast %26 : vector<1x256xf32> to vector<4x256xf32>
    %28 = arith.mulf %23, %27 : vector<4x256xf32>
    %c4 = arith.constant 4 : index
    %c0_13 = arith.constant 0 : index
    %29 = vector.load %arg9[%c4, %c0_13] : memref<36x256xf32, #tpu.memory_space<vmem>>, vector<4x256xf32>
    tpu.vector_store %arg9[%c4, %c0_13], %28 {strides = array<i32>} : memref<36x256xf32, #tpu.memory_space<vmem>>, vector<4x256xf32>,
    %c15_i32 = arith.constant 15 : i32
    %30 = tpu.dynamic_rotate %15 by %c15_i32 dim 1 : vector<4x256xf32>, i32 -> vector<4x256xf32>
    %31 = vector.extract_strided_slice %2 {offsets = [2, 0], sizes = [1, 256], strides = [1, 1]} : vector<9x256xf32> to vector<1x256xf32>
    %32 = vector.shape_cast %31 : vector<1x256xf32> to vector<256xf32>
    %33 = vector.shape_cast %32 : vector<256xf32> to vector<1x256xf32>
    %34 = vector.broadcast %33 : vector<1x256xf32> to vector<4x256xf32>
    %35 = arith.mulf %30, %34 : vector<4x256xf32>
    %c8 = arith.constant 8 : index
    %c0_14 = arith.constant 0 : index
    %36 = vector.load %arg9[%c8, %c0_14] : memref<36x256xf32, #tpu.memory_space<vmem>>, vector<4x256xf32>
    tpu.vector_store %arg9[%c8, %c0_14], %35 {strides = array<i32>} : memref<36x256xf32, #tpu.memory_space<vmem>>, vector<4x256xf32>,
    %c1_i32 = arith.constant 1 : i32
    %37 = tpu.dynamic_rotate %15 by %c1_i32 dim 1 : vector<4x256xf32>, i32 -> vector<4x256xf32>
    %38 = vector.extract_strided_slice %2 {offsets = [3, 0], sizes = [1, 256], strides = [1, 1]} : vector<9x256xf32> to vector<1x256xf32>
    %39 = vector.shape_cast %38 : vector<1x256xf32> to vector<256xf32>
    %40 = vector.shape_cast %39 : vector<256xf32> to vector<1x256xf32>
    %41 = vector.broadcast %40 : vector<1x256xf32> to vector<4x256xf32>
    %42 = arith.mulf %37, %41 : vector<4x256xf32>
    %c12 = arith.constant 12 : index
    %c0_15 = arith.constant 0 : index
    %43 = vector.load %arg9[%c12, %c0_15] : memref<36x256xf32, #tpu.memory_space<vmem>>, vector<4x256xf32>
    tpu.vector_store %arg9[%c12, %c0_15], %42 {strides = array<i32>} : memref<36x256xf32, #tpu.memory_space<vmem>>, vector<4x256xf32>,
    %c16 = arith.constant 16 : index
    %c0_16 = arith.constant 0 : index
    %44 = vector.load %arg9[%c16, %c0_16] : memref<36x256xf32, #tpu.memory_space<vmem>>, vector<4x256xf32>
    tpu.vector_store %arg9[%c16, %c0_16], %15 {strides = array<i32>} : memref<36x256xf32, #tpu.memory_space<vmem>>, vector<4x256xf32>,
    %c255_i32 = arith.constant 255 : i32
    %45 = tpu.dynamic_rotate %15 by %c255_i32 dim 1 : vector<4x256xf32>, i32 -> vector<4x256xf32>
    %46 = vector.extract_strided_slice %2 {offsets = [5, 0], sizes = [1, 256], strides = [1, 1]} : vector<9x256xf32> to vector<1x256xf32>
    %47 = vector.shape_cast %46 : vector<1x256xf32> to vector<256xf32>
    %48 = vector.shape_cast %47 : vector<256xf32> to vector<1x256xf32>
    %49 = vector.broadcast %48 : vector<1x256xf32> to vector<4x256xf32>
    %50 = arith.mulf %45, %49 : vector<4x256xf32>
    %c20 = arith.constant 20 : index
    %c0_17 = arith.constant 0 : index
    %51 = vector.load %arg9[%c20, %c0_17] : memref<36x256xf32, #tpu.memory_space<vmem>>, vector<4x256xf32>
    tpu.vector_store %arg9[%c20, %c0_17], %50 {strides = array<i32>} : memref<36x256xf32, #tpu.memory_space<vmem>>, vector<4x256xf32>,
    %c241_i32 = arith.constant 241 : i32
    %52 = tpu.dynamic_rotate %15 by %c241_i32 dim 1 : vector<4x256xf32>, i32 -> vector<4x256xf32>
    %53 = vector.extract_strided_slice %2 {offsets = [6, 0], sizes = [1, 256], strides = [1, 1]} : vector<9x256xf32> to vector<1x256xf32>
    %54 = vector.shape_cast %53 : vector<1x256xf32> to vector<256xf32>
    %55 = vector.shape_cast %54 : vector<256xf32> to vector<1x256xf32>
    %56 = vector.broadcast %55 : vector<1x256xf32> to vector<4x256xf32>
    %57 = arith.mulf %52, %56 : vector<4x256xf32>
    %c24 = arith.constant 24 : index
    %c0_18 = arith.constant 0 : index
    %58 = vector.load %arg9[%c24, %c0_18] : memref<36x256xf32, #tpu.memory_space<vmem>>, vector<4x256xf32>
    tpu.vector_store %arg9[%c24, %c0_18], %57 {strides = array<i32>} : memref<36x256xf32, #tpu.memory_space<vmem>>, vector<4x256xf32>,
    %c240_i32 = arith.constant 240 : i32
    %59 = tpu.dynamic_rotate %15 by %c240_i32 dim 1 : vector<4x256xf32>, i32 -> vector<4x256xf32>
    %60 = vector.extract_strided_slice %2 {offsets = [7, 0], sizes = [1, 256], strides = [1, 1]} : vector<9x256xf32> to vector<1x256xf32>
    %61 = vector.shape_cast %60 : vector<1x256xf32> to vector<256xf32>
    %62 = vector.shape_cast %61 : vector<256xf32> to vector<1x256xf32>
    %63 = vector.broadcast %62 : vector<1x256xf32> to vector<4x256xf32>
    %64 = arith.mulf %59, %63 : vector<4x256xf32>
    %c28 = arith.constant 28 : index
    %c0_19 = arith.constant 0 : index
    %65 = vector.load %arg9[%c28, %c0_19] : memref<36x256xf32, #tpu.memory_space<vmem>>, vector<4x256xf32>
    tpu.vector_store %arg9[%c28, %c0_19], %64 {strides = array<i32>} : memref<36x256xf32, #tpu.memory_space<vmem>>, vector<4x256xf32>,
    %c239_i32 = arith.constant 239 : i32
    %66 = tpu.dynamic_rotate %15 by %c239_i32 dim 1 : vector<4x256xf32>, i32 -> vector<4x256xf32>
    %67 = vector.extract_strided_slice %2 {offsets = [8, 0], sizes = [1, 256], strides = [1, 1]} : vector<9x256xf32> to vector<1x256xf32>
    %68 = vector.shape_cast %67 : vector<1x256xf32> to vector<256xf32>
    %69 = vector.shape_cast %68 : vector<256xf32> to vector<1x256xf32>
    %70 = vector.broadcast %69 : vector<1x256xf32> to vector<4x256xf32>
    %71 = arith.mulf %66, %70 : vector<4x256xf32>
    %c32 = arith.constant 32 : index
    %c0_20 = arith.constant 0 : index
    %72 = vector.load %arg9[%c32, %c0_20] : memref<36x256xf32, #tpu.memory_space<vmem>>, vector<4x256xf32>
    tpu.vector_store %arg9[%c32, %c0_20], %71 {strides = array<i32>} : memref<36x256xf32, #tpu.memory_space<vmem>>, vector<4x256xf32>,
    %c0_21 = arith.constant 0 : index
    %c0_22 = arith.constant 0 : index
    %73 = vector.load %arg9[%c0_21, %c0_22] : memref<36x256xf32, #tpu.memory_space<vmem>>, vector<36x256xf32>
    %74 = arith.truncf %73 : vector<36x256xf32> to vector<36x256xbf16>
    %cst_23 = arith.constant dense<0.000000e+00> : vector<8x256xf32>
    %75 = tpu.matmul %3, %74, %cst_23 {dimension_numbers = #tpu.dot_dimension_numbers<[1], [0], [0], [1], [0, 0, 1, 1], [], []>} : vector<8x36xbf16>, vector<36x256xbf16>, vector<8x256xf32> -> vector<8x256xf32>
    %76 = arith.truncf %75 : vector<8x256xf32> to vector<8x256xbf16>
    %77 = arith.index_cast %c0_i32 : i32 to index
    %c0_24 = arith.constant 0 : index
    %c0_25 = arith.constant 0 : index
    %78 = vector.load %arg6[%77, %c0_24, %c0_25] : memref<1x8x256xbf16, #tpu.memory_space<vmem>>, vector<1x8x256xbf16>
    %79 = vector.shape_cast %78 : vector<1x8x256xbf16> to vector<8x256xbf16>
    %80 = vector.shape_cast %76 : vector<8x256xbf16> to vector<1x8x256xbf16>
    tpu.vector_store %arg6[%77, %c0_24, %c0_25], %80 {strides = array<i32>} : memref<1x8x256xbf16, #tpu.memory_space<vmem>>, vector<1x8x256xbf16>,
    %cst_26 = arith.constant dense<0.000000e+00> : vector<8xf32>
    %81 = vector.multi_reduction <add>, %75, %cst_26 [1] : vector<8x256xf32> to vector<8xf32>
    %82 = vector.shape_cast %81 : vector<8xf32> to vector<1x8xf32>
    %83 = arith.addf %4, %82 : vector<1x8xf32>
    %84 = arith.mulf %75, %75 : vector<8x256xf32>
    %cst_27 = arith.constant dense<0.000000e+00> : vector<8xf32>
    %85 = vector.multi_reduction <add>, %84, %cst_27 [1] : vector<8x256xf32> to vector<8xf32>
    %86 = vector.shape_cast %85 : vector<8xf32> to vector<1x8xf32>
    %87 = arith.addf %5, %86 : vector<1x8xf32>
    %c1_i32_28 = arith.constant 1 : i32
    %c0_29 = arith.constant 0 : index
    %c0_30 = arith.constant 0 : index
    %c0_31 = arith.constant 0 : index
    %88 = vector.load %arg7[%c0_29, %c0_30, %c0_31] : memref<1x1x8xf32, #tpu.memory_space<vmem>>, vector<1x1x8xf32>
    %89 = vector.shape_cast %88 : vector<1x1x8xf32> to vector<1x8xf32>
    %90 = vector.shape_cast %83 : vector<1x8xf32> to vector<1x1x8xf32>
    tpu.vector_store %arg7[%c0_29, %c0_30, %c0_31], %90 {strides = array<i32>} : memref<1x1x8xf32, #tpu.memory_space<vmem>>, vector<1x1x8xf32>,
    %c0_32 = arith.constant 0 : index
    %c0_33 = arith.constant 0 : index
    %c0_34 = arith.constant 0 : index
    %91 = vector.load %arg8[%c0_32, %c0_33, %c0_34] : memref<1x1x8xf32, #tpu.memory_space<vmem>>, vector<1x1x8xf32>
    %92 = vector.shape_cast %91 : vector<1x1x8xf32> to vector<1x8xf32>
    %93 = vector.shape_cast %87 : vector<1x8xf32> to vector<1x1x8xf32>
    tpu.vector_store %arg8[%c0_32, %c0_33, %c0_34], %93 {strides = array<i32>} : memref<1x1x8xf32, #tpu.memory_space<vmem>>, vector<1x1x8xf32>,
    return
  }
  func.func @transform_0(%arg0: i32) -> (i32, i32) {
    %c0_i32 = arith.constant 0 : i32
    %c0_i32_0 = arith.constant 0 : i32
    %c0_i32_1 = arith.constant 0 : i32
    return %c0_i32, %c0_i32_0 : i32, i32
  }
  func.func @transform_1(%arg0: i32) -> (i32, i32) {
    %c0_i32 = arith.constant 0 : i32
    %c0_i32_0 = arith.constant 0 : i32
    %c0_i32_1 = arith.constant 0 : i32
    return %c0_i32, %c0_i32_0 : i32, i32
  }
  func.func @transform_2(%arg0: i32) -> (i32, i32) {
    %c0_i32 = arith.constant 0 : i32
    %c0_i32_0 = arith.constant 0 : i32
    %c0_i32_1 = arith.constant 0 : i32
    return %c0_i32, %c0_i32_0 : i32, i32
  }
  func.func @transform_3(%arg0: i32) -> (i32, i32, i32) {
    %c0_i32 = arith.constant 0 : i32
    %c0_i32_0 = arith.constant 0 : i32
    %c0_i32_1 = arith.constant 0 : i32
    return %arg0, %c0_i32, %c0_i32_0 : i32, i32, i32
  }
  func.func @transform_4(%arg0: i32) -> (i32, i32) {
    %c0_i32 = arith.constant 0 : i32
    %c0_i32_0 = arith.constant 0 : i32
    %c0_i32_1 = arith.constant 0 : i32
    return %c0_i32, %c0_i32_0 : i32, i32
  }
  func.func @transform_5(%arg0: i32) -> (i32, i32, i32) {
    %c0_i32 = arith.constant 0 : i32
    %c0_i32_0 = arith.constant 0 : i32
    %c0_i32_1 = arith.constant 0 : i32
    return %arg0, %c0_i32, %c0_i32_0 : i32, i32, i32
  }
  func.func @transform_6(%arg0: i32) -> (i32, i32, i32) {
    %c0_i32 = arith.constant 0 : i32
    %c0_i32_0 = arith.constant 0 : i32
    %c0_i32_1 = arith.constant 0 : i32
    return %arg0, %c0_i32, %c0_i32_0 : i32, i32, i32
  }
  func.func @transform_7(%arg0: i32) -> (i32, i32, i32) {
    %c0_i32 = arith.constant 0 : i32
    %c0_i32_0 = arith.constant 0 : i32
    %c0_i32_1 = arith.constant 0 : i32
    return %arg0, %c0_i32, %c0_i32_0 : i32, i32, i32
  }
}

module attributes {stable_mosaic.version = 11 : i64} {
  func.func @_bn_apply_kernel(%arg0: i32, %arg1: memref<8x1xf32, #tpu.memory_space<vmem>>, %arg2: memref<8x1xf32, #tpu.memory_space<vmem>>, %arg3: memref<1x8x256xbf16, #tpu.memory_space<vmem>>, %arg4: memref<1x8x256xf32, #tpu.memory_space<vmem>>) attributes {dimension_semantics = [#tpu.dimension_semantics<parallel>], iteration_bounds = array<i64: 2>, scalar_prefetch = 0 : i64, scratch_operands = 0 : i64, tpu.core_type = #tpu.core_type<tc>, window_params = [{pipeline_mode = #tpu.pipeline_mode<synchronous>, transform_indices = @transform_0, window_bounds = array<i64: 8, 1>}, {pipeline_mode = #tpu.pipeline_mode<synchronous>, transform_indices = @transform_1, window_bounds = array<i64: 8, 1>}, {transform_indices = @transform_2, window_bounds = array<i64: 1, 8, 256>}, {transform_indices = @transform_3, window_bounds = array<i64: 1, 8, 256>}]} {
    %c0 = arith.constant 0 : index
    %c0_0 = arith.constant 0 : index
    %c0_1 = arith.constant 0 : index
    %0 = vector.load %arg3[%c0, %c0_0, %c0_1] : memref<1x8x256xbf16, #tpu.memory_space<vmem>>, vector<1x8x256xbf16>
    %1 = arith.extf %0 : vector<1x8x256xbf16> to vector<1x8x256xf32>
    %c0_2 = arith.constant 0 : index
    %c0_3 = arith.constant 0 : index
    %2 = vector.load %arg1[%c0_2, %c0_3] : memref<8x1xf32, #tpu.memory_space<vmem>>, vector<8x1xf32>
    %3 = vector.shape_cast %2 : vector<8x1xf32> to vector<1x8x1xf32>
    %4 = vector.broadcast %3 : vector<1x8x1xf32> to vector<1x8x256xf32>
    %5 = arith.mulf %1, %4 : vector<1x8x256xf32>
    %c0_4 = arith.constant 0 : index
    %c0_5 = arith.constant 0 : index
    %6 = vector.load %arg2[%c0_4, %c0_5] : memref<8x1xf32, #tpu.memory_space<vmem>>, vector<8x1xf32>
    %7 = vector.shape_cast %6 : vector<8x1xf32> to vector<1x8x1xf32>
    %8 = vector.broadcast %7 : vector<1x8x1xf32> to vector<1x8x256xf32>
    %9 = arith.addf %5, %8 : vector<1x8x256xf32>
    %c0_6 = arith.constant 0 : index
    %c0_7 = arith.constant 0 : index
    %c0_8 = arith.constant 0 : index
    %10 = vector.load %arg4[%c0_6, %c0_7, %c0_8] : memref<1x8x256xf32, #tpu.memory_space<vmem>>, vector<1x8x256xf32>
    tpu.vector_store %arg4[%c0_6, %c0_7, %c0_8], %9 {strides = array<i32>} : memref<1x8x256xf32, #tpu.memory_space<vmem>>, vector<1x8x256xf32>,
    return
  }
  func.func @transform_0(%arg0: i32) -> (i32, i32) {
    %c0_i32 = arith.constant 0 : i32
    %c0_i32_0 = arith.constant 0 : i32
    %c0_i32_1 = arith.constant 0 : i32
    return %c0_i32, %c0_i32_0 : i32, i32
  }
  func.func @transform_1(%arg0: i32) -> (i32, i32) {
    %c0_i32 = arith.constant 0 : i32
    %c0_i32_0 = arith.constant 0 : i32
    %c0_i32_1 = arith.constant 0 : i32
    return %c0_i32, %c0_i32_0 : i32, i32
  }
  func.func @transform_2(%arg0: i32) -> (i32, i32, i32) {
    %c0_i32 = arith.constant 0 : i32
    %c0_i32_0 = arith.constant 0 : i32
    %c0_i32_1 = arith.constant 0 : i32
    return %arg0, %c0_i32, %c0_i32_0 : i32, i32, i32
  }
  func.func @transform_3(%arg0: i32) -> (i32, i32, i32) {
    %c0_i32 = arith.constant 0 : i32
    %c0_i32_0 = arith.constant 0 : i32
    %c0_i32_1 = arith.constant 0 : i32
    return %arg0, %c0_i32, %c0_i32_0 : i32, i32, i32
  }
}

</mosaic_0001>

<bundles_post_ra>
// kernel: _lambda_.5
= control target key start
LH: loop header
LB: loop body
LE: loop exit
PB: predicated region body
PF: predicated region fallthrough
CT: control target
= control target key end

     0   :  { %s299_s12 = smov 0   ;;  %s322_s0 = inlined_call_operand.vmem [shape: f32[8,1], index: 0, kind: input, shape index: {}]   ;;  %s323_s1 = inlined_call_operand.vmem [shape: f32[8,1], index: 1, kind: input, shape index: {}]   ;;  %s324_s2 = inlined_call_operand.vmem [shape: bf16[2,8,256], index: 2, kind: input, shape index: {}]   ;;  %s325_s3 = inlined_call_operand.vmem [shape: f32[2,8,256], index: 3, kind: output, shape index: {}]  }
   0x1 LB: > { %s247_s13 = sadd.s32 4294967295, %s276_s12   ;;  %p251_p0 = scmp.ge.s32.totalorder %s276_s12, 1  ;;  %s276_s12 = sphi %s299_s12, %s13_s12  }
   0x2   : > { %p137_p1 = scmp.lt.s32.totalorder %s276_s12, 3 }
   0x4   : > { %p138_p2 = pnand %p251_p0, %p137_p1 }
   0x5   : > { %p161_p3 = scmp.lt.s32.totalorder (!%p138_p2), %s247_s13, 1 }
   0x6   : > { %141 = sbr.rel (%p138_p2) target bundleno = 140 (0x8c), region = 32 }
   0xb   : > { %v174_v0 = vld [vmem:[%s322_s0] sm:$0xff]  ;;  %v278_v1 = vmov 0   ;;  %s327_s13 = smov (!%p161_p3, %s247_s13), 1 }
   0xc   : > { %269 = vset.pattern.permute.xlu0 %v278_v1  ;;  %v182_v2 = vld [vmem:[%s323_s1] sm:$0xff]  ;;  %s258_s18 = sshll.u32 %s327_s13, 3  ;;  %s259_s22 = sshll.u32 %s327_s13, 4 }
   0xd   : > { %177 = vperm.xlu0 %269, %v174_v0   ;;  %s165_s21 = scalar_lea.vmem %s324_s2, %s258_s18  ;;  %s170_s25 = scalar_lea.vmem %s325_s3, %s259_s22 }
   0xe   : > { %v171_v4 = vld [vmem:[%s165_s21] sm:$0xff] }
   0xf   : > { %v172_v5 = vunpack.c.l.bf16 %v171_v4  ;;  %v173_v6 = vunpack.c.h.bf16 %v171_v4 }
  0x15   : > { %185 = vperm.xlu0 %269, %v182_v2  }
  0x7f   : > { %v178_v3 = vpop.permute.xlu0 %177 }
  0x80   : > { %v180_v7 = vmul.f32 %v178_v3, %v172_v5  ;;  %v181_v8 = vmul.f32 %v178_v3, %v173_v6 }
  0x87   : > { %v186_v9 = vpop.permute.xlu0 %185 }
  0x88   : > { %v188_v10 = vadd.f32 %v186_v9, %v180_v7  ;;  %v189_v11 = vadd.f32 %v186_v9, %v181_v8 }
  0x8a   : > { %190 = vst [vmem:[%s170_s25] sm:$0xff] %v188_v10 }
  0x8b   : > { %191 = vst [vmem:[%s170_s25 + $0x8] sm:$0xff] %v189_v11 }
  0x8c PF: > { %s13_s12 = sadd.s32 1, %s276_s12  }
  0x8d   : > { %p10_p4 = scmp.ge.s32.totalorder %s13_s12, 4  }
  0x8f   :  { %12 = sbr.rel (!%p10_p4) target bundleno = 1 (0x1), region = 62 }

// kernel: _lambda_.3
= control target key start
LH: loop header
LB: loop body
LE: loop exit
PB: predicated region body
PF: predicated region fallthrough
CT: control target
= control target key end

     0   :  { %s788_s24 = smov 0   ;;  %s873_s0 = inlined_call_operand.vmem [shape: f32[4,1], index: 0, kind: input, shape index: {}]   ;;  %s874_s1 = inlined_call_operand.vmem [shape: f32[4,1], index: 1, kind: input, shape index: {}]   ;;  %s875_s2 = inlined_call_operand.vmem [shape: f32[9,256], index: 2, kind: input, shape index: {}]   ;;  %s876_s3 = inlined_call_operand.vmem [shape: f32[2,4,256], index: 3, kind: input, shape index: {}]   ;;  %s877_s4 = inlined_call_operand.vmem [shape: bf16[4,36], index: 4, kind: input, shape index: {}]   ;;  %s878_s5 = inlined_call_operand.vmem [shape: bf16[2,4,256], index: 5, kind: output, shape index: {0}]   ;;  %s879_s6 = inlined_call_operand.vmem [shape: f32[2,1,4], index: 6, kind: output, shape index: {1}]   ;;  %s880_s7 = inlined_call_operand.vmem [shape: f32[2,1,4], index: 7, kind: output, shape index: {2}]  }
   0x1 LB: > { %s694_s25 = sadd.s32 4294967295, %s736_s24   ;;  %p698_p0 = scmp.ge.s32.totalorder %s736_s24, 1  ;;  %s736_s24 = sphi %s788_s24, %s18_s24  }
   0x2   : > { %p242_p1 = scmp.lt.s32.totalorder %s736_s24, 3 }
   0x4   : > { %p243_p2 = pnand %p698_p0, %p242_p1 }
   0x5   : > { %p280_p3 = scmp.lt.s32.totalorder (!%p243_p2), %s694_s25, 1  ;;  %s740_s11 = smov (!%p243_p2), 16  }
   0x6   : > { %246 = sbr.rel (%p243_p2) target bundleno = 622 (0x26e), region = 40  ;;  %s741_s12 = smov (!%p243_p2), 1  }
   0x7   : > { %s742_s13 = smov (!%p243_p2), 127   ;;  %s743_s14 = smov (!%p243_p2), 113  }
   0x8   : > { %s744_s15 = smov (!%p243_p2), 112   ;;  %s745_s16 = smov (!%p243_p2), 17  }
   0x9   : > { %s746_s17 = smov (!%p243_p2), 111   ;;  %s747_s18 = smov (!%p243_p2), 15  }
   0xb   : > { %v297_v0 = vld [vmem:[%s873_s0] sm:$0xf]  ;;  %v738_v1 = vmov 0   ;;  %s882_s25 = smov (!%p280_p3, %s694_s25), 1  ;;  %v739_v3 = vmov 839922192   ;;  %v336_v32 = vlaneseq }
   0xc   : > { %727 = vset.pattern.permute.xlu0 %v738_v1  ;;  %v298_v2 = vld [vmem:[%s874_s1] sm:$0xf]  ;;  %v310_v4 = vunpack.c.l.s4 %v739_v3  ;;  %s707_s30 = sshll.u32 %s882_s25, 3  ;;  %v820_v35 = vld [vmem:[%s875_s2 + $0x8] sm:$0xff]  ;;  %vm524_vm7 = vcmask 1041408   ;;  %vm520_vm9 = vcmask 293888  }
   0xd   : > { %307 = vperm.xlu0 %727, %v297_v0   ;;  %s284_s10 = scalar_lea.vmem %s876_s3, %s707_s30  ;;  %v810_v33 = vand.u32 127, %v336_v32  ;;  %v815_v34 = vld [vmem:[%s875_s2] sm:$0xff]  ;;  %v360_v37 = vperm.slane %v820_v35, 1  ;;  %v433_v48 = vperm.slane %v820_v35, 5  ;;  %v457_v58 = vperm.slane %v820_v35, 6  ;;  %s708_s8 = sshll.u32 %s882_s25, 2 }
   0xe   : > { %v311_v6 = vunpack.c.0.s8 %v310_v4  ;;  %v304_v8 = vld [vmem:[%s284_s10] sm:$0xff]  ;;  %v359_v36 = vperm.slane %v815_v34, 1  ;;  %v432_v47 = vperm.slane %v815_v34, 5  ;;  %v456_v57 = vperm.slane %v815_v34, 6 }
   0xf   : > { %vm356_vm0 = vcmp.lt.s32.totalorder %v810_v33, 16  ;;  %vm429_vm1 = vcmp.lt.s32.totalorder %v810_v33, 127  ;;  %vm453_vm2 = vcmp.lt.s32.totalorder %v810_v33, 113  ;;  %vm471_vm3 = vcmp.lt.s32.totalorder %v810_v33, 112 }
  0x10   : > { %v474_v1 = vperm.slane %v815_v34, 7  ;;  %vm338_vm4 = vcmp.lt.s32.totalorder %v810_v33, 17  ;;  %vm495_vm5 = vcmp.lt.s32.totalorder %v810_v33, 111  ;;  %vm398_vm6 = vcmp.lt.s32.totalorder %v810_v33, 1 }
  0x11   : > { %vm380_vm8 = vcmp.lt.s32.totalorder %v810_v33, 15  ;;  %vm565_vm10 = vcmask 1043456   ;;  %vm583_vm11 = vcmask 24576  }
  0x15   : > { %317 = vperm.xlu0 %727, %v298_v2   ;;  %v475_v2 = vperm.slane %v820_v35, 7 }
  0x7f   : > { %v308_v5 = vpop.permute.xlu0 %307 }
  0x80   : > { %v312_v7 = vperm.slane %v308_v5, %v311_v6 }
  0x82   : > { %v314_v10 = vmul.f32 %v312_v7, %v304_v8 }
  0x87   : > { %v318_v9 = vpop.permute.xlu0 %317 }
  0x88   : > { %v322_v11 = vperm.slane %v318_v9, %v311_v6 }
  0x8a   : > { %v324_v12 = vadd.f32 %v322_v11, %v314_v10  ;;  %v341_v11 = vperm.slane %v815_v34, 0 }
  0x8c   : > { %v325_v13 = vmax.f32 %v324_v12, 0.0  ;;  %v342_v12 = vperm.slane %v820_v35, 0 }
  0x8e   : > { %327 = vst [vmem:[#allocation1] ss:$2 sm:$0xff] %v325_v13 }
  0x95   : > { %v328_v14 = vld.sshfl [vmem:[#allocation1] sm:$0xff pattern:$0x75316420]  ;;  %v329_v15 = vld.sshfl [vmem:[#allocation1 + $0x8] sm:$0xff pattern:$0x75316420] }
  0x96   : > { %347 = vst [vmem:[#allocation1] ss:$2 sm:$0xff] %v325_v13 }
  0x9d   : > { %v349_v16 = vld.sshfl [vmem:[#allocation1 + $0x8] sm:$0xff pattern:$0x75316420]  ;;  %v348_v17 = vld.sshfl [vmem:[#allocation1] sm:$0xff pattern:$0x75316420] }
  0x9e   : > { %354 = vrot.lane.b32.xlu2 %v349_v16, %s740_s11  ;;  %352 = vrot.lane.b32.xlu1 %v348_v17, %s740_s11  ;;  %371 = vst [vmem:[#allocation1] ss:$2 sm:$0xff] %v325_v13  ;;  %s289_s11 = scalar_lea.vmem %s878_s5, %s708_s8 }
  0xa5   : > { %v372_v18 = vld.sshfl [vmem:[#allocation1] sm:$0xff pattern:$0x75316420]  ;;  %v373_v19 = vld.sshfl [vmem:[#allocation1 + $0x8] sm:$0xff pattern:$0x75316420] }
  0xa6   : > { %389 = vst [vmem:[#allocation1] ss:$2 sm:$0xff] %v325_v13 }
  0xad   : > { %v390_v20 = vld.sshfl [vmem:[#allocation1] sm:$0xff pattern:$0x75316420]  ;;  %v391_v21 = vld.sshfl [vmem:[#allocation1 + $0x8] sm:$0xff pattern:$0x75316420] }
  0xae   : > { %394 = vrot.lane.b32.xlu0 %v390_v20, %s741_s12  ;;  %413 = vst [vmem:[#allocation1] ss:$2 sm:$0xff] %v325_v13  ;;  %v728_v20 = vld [vmem:[%s875_s2 + $0x10] ss:$0 sm:$0xff] }
  0xb5   : > { %v414_v22 = vld.sshfl [vmem:[#allocation1] sm:$0xff pattern:$0x75316420]  ;;  %v415_v23 = vld.sshfl [vmem:[#allocation1 + $0x8] sm:$0xff pattern:$0x75316420] }
  0xb6   : > { %418 = vst [vmem:[#allocation2 + $0x48] sm:$0xf] %v414_v22 }
  0xb7   : > { %419 = vst [vmem:[#allocation2 + $0x28] sm:$0xf] %v415_v23 }
  0xb8   : > { %420 = vst [vmem:[#allocation1] ss:$2 sm:$0xff] %v325_v13 }
  0xbf   : > { %v421_v24 = vld.sshfl [vmem:[#allocation1] sm:$0xff pattern:$0x75316420]  ;;  %v422_v25 = vld.sshfl [vmem:[#allocation1 + $0x8] sm:$0xff pattern:$0x75316420] }
  0xc0   : > { %425 = vrot.lane.b32.xlu2 %v421_v24, %s742_s13  ;;  %444 = vst [vmem:[#allocation1] ss:$2 sm:$0xff] %v325_v13 }
  0xc7   : > { %v446_v26 = vld.sshfl [vmem:[#allocation1 + $0x8] sm:$0xff pattern:$0x75316420]  ;;  %v445_v27 = vld.sshfl [vmem:[#allocation1] sm:$0xff pattern:$0x75316420] }
  0xc8   : > { %427 = vrot.lane.b32.xlu2 %v422_v25, %s742_s13  ;;  %451 = vrot.lane.b32.xlu0 %v446_v26, %s743_s14  ;;  %462 = vst [vmem:[#allocation1] ss:$2 sm:$0xff] %v325_v13 }
  0xcf   : > { %v464_v28 = vld.sshfl [vmem:[#allocation1 + $0x8] sm:$0xff pattern:$0x75316420]  ;;  %v463_v29 = vld.sshfl [vmem:[#allocation1] sm:$0xff pattern:$0x75316420] }
  0xd0   : > { %449 = vrot.lane.b32.xlu2 %v445_v27, %s743_s14  ;;  %469 = vrot.lane.b32.xlu1 %v464_v28, %s744_s15  ;;  %486 = vst [vmem:[#allocation1] ss:$2 sm:$0xff] %v325_v13  ;;  %v401_v27 = vperm.slane %v815_v34, 3  ;;  %v402_v28 = vperm.slane %v820_v35, 3  ;;  %s292_s14 = scalar_lea.vmem %s879_s6, %s882_s25 }
  0xd1   : > { %467 = vrot.lane.b32.xlu0 %v463_v29, %s744_s15 }
  0xd7   : > { %v487_v30 = vld.sshfl [vmem:[#allocation1] sm:$0xff pattern:$0x75316420]  ;;  %v488_v31 = vld.sshfl [vmem:[#allocation1 + $0x8] sm:$0xff pattern:$0x75316420] }
  0xd8   : > { %332 = vrot.lane.b32.xlu2 %v328_v14, %s745_s16  ;;  %491 = vrot.lane.b32.xlu1 %v487_v30, %s746_s17 }
  0xd9   : > { %334 = vrot.lane.b32.xlu0 %v329_v15, %s745_s16 }
  0xe0   : > { %378 = vrot.lane.b32.xlu2 %v373_v19, %s747_s18  ;;  %493 = vrot.lane.b32.xlu1 %v488_v31, %s746_s17  ;;  %s295_s17 = scalar_lea.vmem %s880_s7, %s882_s25 }
  0xe8   : > { %396 = vrot.lane.b32.xlu1 %v391_v21, %s741_s12  ;;  %v729_v21 = vld [vmem:[%s875_s2 + $0x18] ss:$0 sm:$0xff] }
  0xf0   : > { %376 = vrot.lane.b32.xlu1 %v372_v18, %s747_s18 }
  0xf8   : > { %v355_v38 = vpop.permute.xlu2 %354 }
 0x110   : > { %v353_v39 = vpop.permute.xlu1 %352 }
 0x111   : > { %v357_v40 = vsel %vm356_vm0, %v353_v39, %v355_v38  ;;  %v358_v41 = vsel %vm356_vm0, %v355_v38, %v353_v39 }
 0x112   : > { %v361_v42 = vmul.f32 %v359_v36, %v358_v41  ;;  %v362_v43 = vmul.f32 %v360_v37, %v357_v40 }
 0x114   : > { %v365_v44 = vrot.slane %v361_v42, 4  ;;  %v366_v45 = vrot.slane %v362_v43, 4 }
 0x116   : > { %369 = vst [vmem:[#allocation2 + $0x30] sm:$0xf0] %v365_v44  ;;  %v383_v44 = vperm.slane %v815_v34, 2 }
 0x117   : > { %370 = vst [vmem:[#allocation2] sm:$0xf0] %v366_v45  ;;  %v384_v45 = vperm.slane %v820_v35, 2 }
 0x11a   : > { %v426_v46 = vpop.permute.xlu2 %425 }
 0x120   : > { %v395_v56 = vpop.permute.xlu0 %394 }
 0x122   : > { %v428_v49 = vpop.permute.xlu2 %427 }
 0x123   : > { %v430_v50 = vsel %vm429_vm1, %v426_v46, %v428_v49  ;;  %v431_v51 = vsel %vm429_vm1, %v428_v49, %v426_v46 }
 0x124   : > { %v434_v52 = vmul.f32 %v432_v47, %v430_v50  ;;  %v435_v53 = vmul.f32 %v433_v48, %v431_v51 }
 0x126   : > { %v438_v54 = vrot.slane %v434_v52, 4  ;;  %v439_v55 = vrot.slane %v435_v53, 4 }
 0x128   : > { %442 = vst [vmem:[#allocation2 + $0x48] sm:$0xf0] %v438_v54 }
 0x129   : > { %443 = vst [vmem:[#allocation2 + $0x28] sm:$0xf0] %v439_v55 }
 0x12a   : > { %v450_v59 = vpop.permute.xlu2 %449 }
 0x12f   : > { %v508_v51 = vld [vmem:[#allocation2 + $0x48] sm:$0xff] }
 0x130   : > { %v509_v55 = vld [vmem:[#allocation2 + $0x28] sm:$0xff] }
 0x132   : > { %v333_v14 = vpop.permute.xlu2 %332 }
 0x13a   : > { %v452_v60 = vpop.permute.xlu0 %451  ;;  %v379_v49 = vpop.permute.xlu2 %378 }
 0x13b   : > { %v454_v61 = vsel %vm453_vm2, %v450_v59, %v452_v60  ;;  %v455_v62 = vsel %vm453_vm2, %v452_v60, %v450_v59 }
 0x13c   : > { %v458_v63 = vmul.f32 %v456_v57, %v454_v61  ;;  %v459_v0 = vmul.f32 %v457_v58, %v455_v62 }
 0x13e   : > { %460 = vst [vmem:[#allocation2 + $0x8] sm:$0xf] %v458_v63  ;;  %v303_v63 = vld [vmem:[%s877_s4] sm:$0x3] }
 0x13f   : > { %461 = vst [vmem:[#allocation2 + $0x20] sm:$0xf] %v459_v0 }
 0x142   : > { %v470_v3 = vpop.permute.xlu1 %469 }
 0x143   : > { %v468_v4 = vpop.permute.xlu0 %467 }
 0x144   : > { %v472_v5 = vsel %vm471_vm3, %v468_v4, %v470_v3  ;;  %v473_v6 = vsel %vm471_vm3, %v470_v3, %v468_v4 }
 0x145   : > { %v476_v7 = vmul.f32 %v474_v1, %v472_v5  ;;  %v477_v8 = vmul.f32 %v475_v2, %v473_v6 }
 0x147   : > { %v480_v9 = vrot.slane %v476_v7, 4  ;;  %v481_v10 = vrot.slane %v477_v8, 4 }
 0x149   : > { %484 = vst [vmem:[#allocation2 + $0x8] sm:$0xf0] %v480_v9 }
 0x14a   : > { %485 = vst [vmem:[#allocation2 + $0x20] sm:$0xf0] %v481_v10  ;;  %v492_v13 = vpop.permute.xlu1 %491 }
 0x14b   : > { %v335_v15 = vpop.permute.xlu0 %334 }
 0x14c   : > { %v339_v16 = vsel %vm338_vm4, %v333_v14, %v335_v15  ;;  %v340_v17 = vsel %vm338_vm4, %v335_v15, %v333_v14 }
 0x14d   : > { %v343_v18 = vmul.f32 %v341_v11, %v340_v17  ;;  %v344_v19 = vmul.f32 %v342_v12, %v339_v16 }
 0x14f   : > { %345 = vst [vmem:[#allocation2 + $0x30] sm:$0xf] %v343_v18 }
 0x150   : > { %346 = vst [vmem:[#allocation2] sm:$0xf] %v344_v19  ;;  %v510_v46 = vld [vmem:[#allocation2 + $0x8] sm:$0xff] }
 0x151   : > { %v511_v48 = vld [vmem:[#allocation2 + $0x20] sm:$0xff]  ;;  %v516_v54 = vpack.c.bf16 %v510_v46, %v508_v51 }
 0x152   : > { %v494_v22 = vpop.permute.xlu1 %493  ;;  %v517_v58 = vpack.c.bf16 %v511_v48, %v509_v55 }
 0x153   : > { %v496_v23 = vsel %vm495_vm5, %v492_v13, %v494_v22  ;;  %v497_v24 = vsel %vm495_vm5, %v494_v22, %v492_v13 }
 0x154   : > { %v500_v25 = vmul.f32 %v728_v20, %v496_v23  ;;  %v501_v26 = vmul.f32 %v729_v21, %v497_v24 }
 0x156   : > { %502 = vst [vmem:[#allocation2 + $0x40] sm:$0xf] %v500_v25  ;;  %v504_v34 = vld [vmem:[#allocation2 + $0x30] sm:$0xff] }
 0x157   : > { %503 = vst [vmem:[#allocation2 + $0x38] sm:$0xf] %v501_v26  ;;  %v505_v60 = vld [vmem:[#allocation2] sm:$0xff] }
 0x15a   : > { %v397_v29 = vpop.permute.xlu1 %396 }
 0x15b   : > { %v399_v30 = vsel %vm398_vm6, %v395_v56, %v397_v29  ;;  %v400_v31 = vsel %vm398_vm6, %v397_v29, %v395_v56 }
 0x15c   : > { %v403_v32 = vmul.f32 %v401_v27, %v400_v31  ;;  %v404_v36 = vmul.f32 %v402_v28, %v399_v30 }
 0x15d   : > { %v512_v37 = vld [vmem:[#allocation2 + $0x40] sm:$0xf] }
 0x15e   : > { %v407_v38 = vrot.slane %v403_v32, 4  ;;  %v408_v39 = vrot.slane %v404_v36, 4  ;;  %v518_v40 = vpack.c.bf16 %v512_v37, %v512_v37  ;;  %v513_v41 = vld [vmem:[#allocation2 + $0x38] sm:$0xf] }
 0x15f   : > { %v519_v42 = vpack.c.bf16 %v513_v41, %v513_v41 }
 0x160   : > { %411 = vst [vmem:[#allocation2 + $0x18] sm:$0xf0] %v407_v38  ;;  %v526_v43 = vsel %vm524_vm7, %v518_v40, 0 }
 0x161   : > { %412 = vst [vmem:[#allocation2 + $0x10] sm:$0xf0] %v408_v39  ;;  %536 = vmatpush.bf16.msra.mxu0 %v526_v43  ;;  %v529_v47 = vsel %vm524_vm7, %v519_v42, 0 }
 0x162   : > { %549 = vmatpush.bf16.msra.mxu1 %v529_v47  ;;  %v377_v50 = vpop.permute.xlu1 %376 }
 0x163   : > { %v381_v52 = vsel %vm380_vm8, %v377_v50, %v379_v49  ;;  %v382_v53 = vsel %vm380_vm8, %v379_v49, %v377_v50 }
 0x164   : > { %v385_v56 = vmul.f32 %v383_v44, %v382_v53  ;;  %v386_v57 = vmul.f32 %v384_v45, %v381_v52 }
 0x165   : > { %537 = vmatpush.bf16.msra.mxu0 %v516_v54 }
 0x166   : > { %387 = vst [vmem:[#allocation2 + $0x18] sm:$0xf] %v385_v56  ;;  %550 = vmatpush.bf16.msra.mxu1 %v517_v58 }
 0x167   : > { %388 = vst [vmem:[#allocation2 + $0x10] sm:$0xf] %v386_v57 }
 0x16d   : > { %v506_v35 = vld [vmem:[#allocation2 + $0x18] sm:$0xff] }
 0x16e   : > { %v514_v59 = vpack.c.bf16 %v506_v35, %v504_v34  ;;  %v507_v61 = vld [vmem:[#allocation2 + $0x10] sm:$0xff] }
 0x16f   : > { %v515_v62 = vpack.c.bf16 %v507_v61, %v505_v60 }
 0x170   : > { %538 = vmatpush.bf16.msra.mxu0 %v514_v59 }
 0x171   : > { %551 = vmatpush.bf16.msra.mxu1 %v515_v62 }
 0x173   : > { %703 = vmatmul.msk.bf16.vlgmr.msra.gmra.mxu0 %vm520_vm9, %v303_v63 }
 0x174   : > { %704 = vmatmul.msk.bf16.vlgmr.msra.gmra.mxu1 %vm520_vm9, %v303_v63 }
 0x1f0   : > { %v540_v0 = vpop.f32.mrf.mxu0 }
 0x1f1   : > { %v572_v1 = vmul.f32 %v540_v0, %v540_v0  ;;  %v553_v2 = vpop.f32.mrf.mxu1  ;;  %v566_v3 = vsel %vm565_vm10, %v540_v0, 0.0 }
 0x1f2   : > { %v557_v4 = vpack.c.bf16 %v553_v2, %v540_v0  ;;  %v573_v5 = vmul.f32 %v553_v2, %v553_v2  ;;  %v567_v6 = vsel %vm565_vm10, %v553_v2, 0.0 }
 0x1f3   : > { %v568_v7 = vadd.f32 %v567_v6, %v566_v3  ;;  %v574_v8 = vsel %vm565_vm10, %v572_v1, 0.0 }
 0x1f4   : > { %v559_v9 = vrot.slane %v557_v4, 2  ;;  %v575_v10 = vsel %vm565_vm10, %v573_v5, 0.0 }
 0x1f5   : > { %569 = vadd.xlane.f32.xlu0 %v568_v7  ;;  %v576_v11 = vadd.f32 %v575_v10, %v574_v8 }
 0x1f6   : > { %v562_v12 = vsel %vm524_vm7, %v557_v4, %v559_v9 }
 0x1f7   : > { %564 = vst [vmem:[%s289_s11] sm:$0xf] %v562_v12  ;;  %577 = vadd.xlane.f32.xlu1 %v576_v11 }
 0x1f8   : > { %v542_v13 = vpop.f32.mrf.mxu0 }
 0x1f9   : > { %v555_v14 = vpop.f32.mrf.mxu1 }
 0x268   : > { %v570_v15 = vpop.xlane.xlu0 %569 }
 0x269   : > { %v581_v16 = vperm.slane %v570_v15, %v810_v33 }
 0x26a   : > { %v578_v17 = vpop.xlane.xlu1 %577 }
 0x26b   : > { %584 = vst.msk [vmem:[%s292_s14] sm:$0x1] %vm583_vm11, %v581_v16  ;;  %v586_v18 = vperm.slane %v578_v17, %v810_v33 }
 0x26d   : > { %588 = vst.msk [vmem:[%s295_s17] sm:$0x1] %vm583_vm11, %v586_v18 }
 0x26e PF: > { %s18_s24 = sadd.s32 1, %s736_s24  }
 0x26f   : > { %p15_p4 = scmp.ge.s32.totalorder %s18_s24, 4  }
 0x271   :  { %17 = sbr.rel (!%p15_p4) target bundleno = 1 (0x1), region = 94 }

// kernel: _lambda_.4
= control target key start
LH: loop header
LB: loop body
LE: loop exit
PB: predicated region body
PF: predicated region fallthrough
CT: control target
= control target key end

     0   :  { %s778_s24 = smov 0   ;;  %s860_s0 = inlined_call_operand.vmem [shape: f32[4,1], index: 0, kind: input, shape index: {}]   ;;  %s861_s1 = inlined_call_operand.vmem [shape: f32[4,1], index: 1, kind: input, shape index: {}]   ;;  %s862_s2 = inlined_call_operand.vmem [shape: f32[9,256], index: 2, kind: input, shape index: {}]   ;;  %s863_s3 = inlined_call_operand.vmem [shape: bf16[2,4,256], index: 3, kind: input, shape index: {}]   ;;  %s864_s4 = inlined_call_operand.vmem [shape: bf16[8,36], index: 4, kind: input, shape index: {}]   ;;  %s865_s5 = inlined_call_operand.vmem [shape: bf16[2,8,256], index: 5, kind: output, shape index: {0}]   ;;  %s866_s6 = inlined_call_operand.vmem [shape: f32[2,1,8], index: 6, kind: output, shape index: {1}]   ;;  %s867_s7 = inlined_call_operand.vmem [shape: f32[2,1,8], index: 7, kind: output, shape index: {2}]  }
   0x1 LB: > { %s684_s25 = sadd.s32 4294967295, %s726_s24   ;;  %p688_p0 = scmp.ge.s32.totalorder %s726_s24, 1  ;;  %s726_s24 = sphi %s778_s24, %s18_s24  }
   0x2   : > { %p242_p1 = scmp.lt.s32.totalorder %s726_s24, 3 }
   0x4   : > { %p243_p2 = pnand %p688_p0, %p242_p1 }
   0x5   : > { %p280_p3 = scmp.lt.s32.totalorder (!%p243_p2), %s684_s25, 1  ;;  %s730_s11 = smov (!%p243_p2), 16  }
   0x6   : > { %246 = sbr.rel (%p243_p2) target bundleno = 621 (0x26d), region = 40  ;;  %s731_s12 = smov (!%p243_p2), 1  }
   0x7   : > { %s732_s13 = smov (!%p243_p2), 127   ;;  %s733_s14 = smov (!%p243_p2), 113  }
   0x8   : > { %s734_s15 = smov (!%p243_p2), 112   ;;  %s735_s16 = smov (!%p243_p2), 17  }
   0x9   : > { %s736_s17 = smov (!%p243_p2), 111   ;;  %s737_s18 = smov (!%p243_p2), 15  }
   0xb   : > { %v297_v0 = vld [vmem:[%s860_s0] sm:$0xf]  ;;  %v728_v1 = vmov 0   ;;  %s869_s25 = smov (!%p280_p3, %s684_s25), 1  ;;  %v729_v3 = vmov 839922192   ;;  %v337_v33 = vlaneseq }
   0xc   : > { %717 = vset.pattern.permute.xlu0 %v728_v1  ;;  %v298_v2 = vld [vmem:[%s861_s1] sm:$0xf]  ;;  %s697_s30 = sshll.u32 %s869_s25, 2  ;;  %v311_v4 = vunpack.c.l.s4 %v729_v3  ;;  %v810_v36 = vld [vmem:[%s862_s2 + $0x8] sm:$0xff]  ;;  %vm525_vm7 = vcmask 1041408   ;;  %vm521_vm9 = vcmask 293888  }
   0xd   : > { %308 = vperm.xlu0 %717, %v297_v0   ;;  %s284_s10 = scalar_lea.vmem %s863_s3, %s697_s30  ;;  %v800_v34 = vand.u32 127, %v337_v33  ;;  %v805_v35 = vld [vmem:[%s862_s2] sm:$0xff]  ;;  %v361_v38 = vperm.slane %v810_v36, 1  ;;  %v434_v49 = vperm.slane %v810_v36, 5  ;;  %v458_v59 = vperm.slane %v810_v36, 6  ;;  %s698_s8 = sshll.u32 %s869_s25, 3 }
   0xe   : > { %v312_v6 = vunpack.c.0.s8 %v311_v4  ;;  %v304_v7 = vld [vmem:[%s284_s10] sm:$0xf]  ;;  %v360_v37 = vperm.slane %v805_v35, 1  ;;  %v433_v48 = vperm.slane %v805_v35, 5  ;;  %v457_v58 = vperm.slane %v805_v35, 6 }
   0xf   : > { %v305_v8 = vunpack.c.l.bf16 %v304_v7  ;;  %vm357_vm0 = vcmp.lt.s32.totalorder %v800_v34, 16  ;;  %vm430_vm1 = vcmp.lt.s32.totalorder %v800_v34, 127  ;;  %vm454_vm2 = vcmp.lt.s32.totalorder %v800_v34, 113 }
  0x10   : > { %vm472_vm3 = vcmp.lt.s32.totalorder %v800_v34, 112  ;;  %v476_v3 = vperm.slane %v810_v36, 7  ;;  %vm339_vm4 = vcmp.lt.s32.totalorder %v800_v34, 17  ;;  %vm496_vm5 = vcmp.lt.s32.totalorder %v800_v34, 111 }
  0x11   : > { %vm399_vm6 = vcmp.lt.s32.totalorder %v800_v34, 1  ;;  %vm381_vm8 = vcmp.lt.s32.totalorder %v800_v34, 15  ;;  %vm573_vm10 = vcmask 57344  }
  0x15   : > { %318 = vperm.xlu0 %717, %v298_v2   ;;  %v475_v2 = vperm.slane %v805_v35, 7 }
  0x7f   : > { %v309_v5 = vpop.permute.xlu0 %308 }
  0x80   : > { %v313_v9 = vperm.slane %v309_v5, %v312_v6 }
  0x82   : > { %v315_v11 = vmul.f32 %v313_v9, %v305_v8 }
  0x87   : > { %v319_v10 = vpop.permute.xlu0 %318 }
  0x88   : > { %v323_v12 = vperm.slane %v319_v10, %v312_v6 }
  0x8a   : > { %v325_v13 = vadd.f32 %v323_v12, %v315_v11  ;;  %v342_v12 = vperm.slane %v805_v35, 0 }
  0x8c   : > { %v326_v14 = vmax.f32 %v325_v13, 0.0  ;;  %v343_v13 = vperm.slane %v810_v36, 0 }
  0x8e   : > { %328 = vst [vmem:[#allocation1] ss:$2 sm:$0xff] %v326_v14 }
  0x95   : > { %v329_v15 = vld.sshfl [vmem:[#allocation1] sm:$0xff pattern:$0x75316420]  ;;  %v330_v16 = vld.sshfl [vmem:[#allocation1 + $0x8] sm:$0xff pattern:$0x75316420] }
  0x96   : > { %348 = vst [vmem:[#allocation1] ss:$2 sm:$0xff] %v326_v14 }
  0x9d   : > { %v350_v17 = vld.sshfl [vmem:[#allocation1 + $0x8] sm:$0xff pattern:$0x75316420]  ;;  %v349_v18 = vld.sshfl [vmem:[#allocation1] sm:$0xff pattern:$0x75316420] }
  0x9e   : > { %355 = vrot.lane.b32.xlu2 %v350_v17, %s730_s11  ;;  %353 = vrot.lane.b32.xlu1 %v349_v18, %s730_s11  ;;  %372 = vst [vmem:[#allocation1] ss:$2 sm:$0xff] %v326_v14  ;;  %s289_s11 = scalar_lea.vmem %s865_s5, %s698_s8 }
  0xa5   : > { %v373_v19 = vld.sshfl [vmem:[#allocation1] sm:$0xff pattern:$0x75316420]  ;;  %v374_v20 = vld.sshfl [vmem:[#allocation1 + $0x8] sm:$0xff pattern:$0x75316420] }
  0xa6   : > { %390 = vst [vmem:[#allocation1] ss:$2 sm:$0xff] %v326_v14 }
  0xad   : > { %v391_v21 = vld.sshfl [vmem:[#allocation1] sm:$0xff pattern:$0x75316420]  ;;  %v392_v22 = vld.sshfl [vmem:[#allocation1 + $0x8] sm:$0xff pattern:$0x75316420] }
  0xae   : > { %395 = vrot.lane.b32.xlu0 %v391_v21, %s731_s12  ;;  %414 = vst [vmem:[#allocation1] ss:$2 sm:$0xff] %v326_v14  ;;  %v718_v21 = vld [vmem:[%s862_s2 + $0x10] ss:$0 sm:$0xff] }
  0xb5   : > { %v415_v23 = vld.sshfl [vmem:[#allocation1] sm:$0xff pattern:$0x75316420]  ;;  %v416_v24 = vld.sshfl [vmem:[#allocation1 + $0x8] sm:$0xff pattern:$0x75316420] }
  0xb6   : > { %419 = vst [vmem:[#allocation2 + $0x48] sm:$0xf] %v415_v23 }
  0xb7   : > { %420 = vst [vmem:[#allocation2 + $0x28] sm:$0xf] %v416_v24 }
  0xb8   : > { %421 = vst [vmem:[#allocation1] ss:$2 sm:$0xff] %v326_v14 }
  0xbf   : > { %v422_v25 = vld.sshfl [vmem:[#allocation1] sm:$0xff pattern:$0x75316420]  ;;  %v423_v26 = vld.sshfl [vmem:[#allocation1 + $0x8] sm:$0xff pattern:$0x75316420] }
  0xc0   : > { %426 = vrot.lane.b32.xlu2 %v422_v25, %s732_s13  ;;  %445 = vst [vmem:[#allocation1] ss:$2 sm:$0xff] %v326_v14 }
  0xc7   : > { %v447_v27 = vld.sshfl [vmem:[#allocation1 + $0x8] sm:$0xff pattern:$0x75316420]  ;;  %v446_v28 = vld.sshfl [vmem:[#allocation1] sm:$0xff pattern:$0x75316420] }
  0xc8   : > { %428 = vrot.lane.b32.xlu2 %v423_v26, %s732_s13  ;;  %452 = vrot.lane.b32.xlu0 %v447_v27, %s733_s14  ;;  %463 = vst [vmem:[#allocation1] ss:$2 sm:$0xff] %v326_v14 }
  0xcf   : > { %v465_v29 = vld.sshfl [vmem:[#allocation1 + $0x8] sm:$0xff pattern:$0x75316420]  ;;  %v464_v30 = vld.sshfl [vmem:[#allocation1] sm:$0xff pattern:$0x75316420] }
  0xd0   : > { %450 = vrot.lane.b32.xlu2 %v446_v28, %s733_s14  ;;  %470 = vrot.lane.b32.xlu1 %v465_v29, %s734_s15  ;;  %487 = vst [vmem:[#allocation1] ss:$2 sm:$0xff] %v326_v14  ;;  %v402_v28 = vperm.slane %v805_v35, 3  ;;  %v403_v29 = vperm.slane %v810_v36, 3  ;;  %s292_s14 = scalar_lea.vmem %s866_s6, %s869_s25 }
  0xd1   : > { %468 = vrot.lane.b32.xlu0 %v464_v30, %s734_s15 }
  0xd7   : > { %v488_v31 = vld.sshfl [vmem:[#allocation1] sm:$0xff pattern:$0x75316420]  ;;  %v489_v32 = vld.sshfl [vmem:[#allocation1 + $0x8] sm:$0xff pattern:$0x75316420] }
  0xd8   : > { %333 = vrot.lane.b32.xlu2 %v329_v15, %s735_s16  ;;  %492 = vrot.lane.b32.xlu1 %v488_v31, %s736_s17 }
  0xd9   : > { %335 = vrot.lane.b32.xlu0 %v330_v16, %s735_s16 }
  0xe0   : > { %379 = vrot.lane.b32.xlu2 %v374_v20, %s737_s18  ;;  %494 = vrot.lane.b32.xlu1 %v489_v32, %s736_s17  ;;  %s295_s17 = scalar_lea.vmem %s867_s7, %s869_s25 }
  0xe8   : > { %397 = vrot.lane.b32.xlu1 %v392_v22, %s731_s12  ;;  %v719_v22 = vld [vmem:[%s862_s2 + $0x18] ss:$0 sm:$0xff] }
  0xf0   : > { %377 = vrot.lane.b32.xlu1 %v373_v19, %s737_s18 }
  0xf8   : > { %v356_v39 = vpop.permute.xlu2 %355 }
 0x110   : > { %v354_v40 = vpop.permute.xlu1 %353 }
 0x111   : > { %v358_v41 = vsel %vm357_vm0, %v354_v40, %v356_v39  ;;  %v359_v42 = vsel %vm357_vm0, %v356_v39, %v354_v40 }
 0x112   : > { %v362_v43 = vmul.f32 %v360_v37, %v359_v42  ;;  %v363_v44 = vmul.f32 %v361_v38, %v358_v41 }
 0x114   : > { %v366_v45 = vrot.slane %v362_v43, 4  ;;  %v367_v46 = vrot.slane %v363_v44, 4 }
 0x116   : > { %370 = vst [vmem:[#allocation2 + $0x30] sm:$0xf0] %v366_v45  ;;  %v384_v45 = vperm.slane %v805_v35, 2 }
 0x117   : > { %371 = vst [vmem:[#allocation2] sm:$0xf0] %v367_v46  ;;  %v385_v46 = vperm.slane %v810_v36, 2 }
 0x11a   : > { %v427_v47 = vpop.permute.xlu2 %426 }
 0x120   : > { %v396_v57 = vpop.permute.xlu0 %395 }
 0x122   : > { %v429_v50 = vpop.permute.xlu2 %428 }
 0x123   : > { %v431_v51 = vsel %vm430_vm1, %v427_v47, %v429_v50  ;;  %v432_v52 = vsel %vm430_vm1, %v429_v50, %v427_v47 }
 0x124   : > { %v435_v53 = vmul.f32 %v433_v48, %v431_v51  ;;  %v436_v54 = vmul.f32 %v434_v49, %v432_v52 }
 0x126   : > { %v439_v55 = vrot.slane %v435_v53, 4  ;;  %v440_v56 = vrot.slane %v436_v54, 4 }
 0x128   : > { %443 = vst [vmem:[#allocation2 + $0x48] sm:$0xf0] %v439_v55 }
 0x129   : > { %444 = vst [vmem:[#allocation2 + $0x28] sm:$0xf0] %v440_v56 }
 0x12a   : > { %v451_v60 = vpop.permute.xlu2 %450 }
 0x12f   : > { %v509_v52 = vld [vmem:[#allocation2 + $0x48] sm:$0xff] }
 0x130   : > { %v510_v56 = vld [vmem:[#allocation2 + $0x28] sm:$0xff] }
 0x132   : > { %v334_v15 = vpop.permute.xlu2 %333 }
 0x13a   : > { %v453_v61 = vpop.permute.xlu0 %452  ;;  %v380_v50 = vpop.permute.xlu2 %379 }
 0x13b   : > { %v455_v62 = vsel %vm454_vm2, %v451_v60, %v453_v61  ;;  %v456_v63 = vsel %vm454_vm2, %v453_v61, %v451_v60 }
 0x13c   : > { %v459_v0 = vmul.f32 %v457_v58, %v455_v62  ;;  %v460_v1 = vmul.f32 %v458_v59, %v456_v63 }
 0x13e   : > { %461 = vst [vmem:[#allocation2 + $0x8] sm:$0xf] %v459_v0  ;;  %v303_v0 = vld [vmem:[%s864_s4] sm:$0xf] }
 0x13f   : > { %462 = vst [vmem:[#allocation2 + $0x20] sm:$0xf] %v460_v1 }
 0x142   : > { %v471_v4 = vpop.permute.xlu1 %470 }
 0x143   : > { %v469_v5 = vpop.permute.xlu0 %468 }
 0x144   : > { %v473_v6 = vsel %vm472_vm3, %v469_v5, %v471_v4  ;;  %v474_v7 = vsel %vm472_vm3, %v471_v4, %v469_v5 }
 0x145   : > { %v477_v8 = vmul.f32 %v475_v2, %v473_v6  ;;  %v478_v9 = vmul.f32 %v476_v3, %v474_v7 }
 0x147   : > { %v481_v10 = vrot.slane %v477_v8, 4  ;;  %v482_v11 = vrot.slane %v478_v9, 4 }
 0x149   : > { %485 = vst [vmem:[#allocation2 + $0x8] sm:$0xf0] %v481_v10 }
 0x14a   : > { %486 = vst [vmem:[#allocation2 + $0x20] sm:$0xf0] %v482_v11  ;;  %v493_v14 = vpop.permute.xlu1 %492 }
 0x14b   : > { %v336_v16 = vpop.permute.xlu0 %335 }
 0x14c   : > { %v340_v17 = vsel %vm339_vm4, %v334_v15, %v336_v16  ;;  %v341_v18 = vsel %vm339_vm4, %v336_v16, %v334_v15 }
 0x14d   : > { %v344_v19 = vmul.f32 %v342_v12, %v341_v18  ;;  %v345_v20 = vmul.f32 %v343_v13, %v340_v17 }
 0x14f   : > { %346 = vst [vmem:[#allocation2 + $0x30] sm:$0xf] %v344_v19 }
 0x150   : > { %347 = vst [vmem:[#allocation2] sm:$0xf] %v345_v20  ;;  %v511_v47 = vld [vmem:[#allocation2 + $0x8] sm:$0xff] }
 0x151   : > { %v512_v49 = vld [vmem:[#allocation2 + $0x20] sm:$0xff]  ;;  %v517_v55 = vpack.c.bf16 %v511_v47, %v509_v52 }
 0x152   : > { %v495_v23 = vpop.permute.xlu1 %494  ;;  %v518_v59 = vpack.c.bf16 %v512_v49, %v510_v56 }
 0x153   : > { %v497_v24 = vsel %vm496_vm5, %v493_v14, %v495_v23  ;;  %v498_v25 = vsel %vm496_vm5, %v495_v23, %v493_v14 }
 0x154   : > { %v501_v26 = vmul.f32 %v718_v21, %v497_v24  ;;  %v502_v27 = vmul.f32 %v719_v22, %v498_v25 }
 0x156   : > { %503 = vst [vmem:[#allocation2 + $0x40] sm:$0xf] %v501_v26  ;;  %v505_v35 = vld [vmem:[#allocation2 + $0x30] sm:$0xff] }
 0x157   : > { %504 = vst [vmem:[#allocation2 + $0x38] sm:$0xf] %v502_v27  ;;  %v506_v61 = vld [vmem:[#allocation2] sm:$0xff] }
 0x15a   : > { %v398_v30 = vpop.permute.xlu1 %397 }
 0x15b   : > { %v400_v31 = vsel %vm399_vm6, %v396_v57, %v398_v30  ;;  %v401_v32 = vsel %vm399_vm6, %v398_v30, %v396_v57 }
 0x15c   : > { %v404_v33 = vmul.f32 %v402_v28, %v401_v32  ;;  %v405_v37 = vmul.f32 %v403_v29, %v400_v31 }
 0x15d   : > { %v513_v38 = vld [vmem:[#allocation2 + $0x40] sm:$0xf] }
 0x15e   : > { %v408_v39 = vrot.slane %v404_v33, 4  ;;  %v409_v40 = vrot.slane %v405_v37, 4  ;;  %v519_v41 = vpack.c.bf16 %v513_v38, %v513_v38  ;;  %v514_v42 = vld [vmem:[#allocation2 + $0x38] sm:$0xf] }
 0x15f   : > { %v520_v43 = vpack.c.bf16 %v514_v42, %v514_v42 }
 0x160   : > { %412 = vst [vmem:[#allocation2 + $0x18] sm:$0xf0] %v408_v39  ;;  %v527_v44 = vsel %vm525_vm7, %v519_v41, 0 }
 0x161   : > { %413 = vst [vmem:[#allocation2 + $0x10] sm:$0xf0] %v409_v40  ;;  %537 = vmatpush.bf16.msra.mxu0 %v527_v44  ;;  %v530_v48 = vsel %vm525_vm7, %v520_v43, 0 }
 0x162   : > { %550 = vmatpush.bf16.msra.mxu1 %v530_v48  ;;  %v378_v51 = vpop.permute.xlu1 %377 }
 0x163   : > { %v382_v53 = vsel %vm381_vm8, %v378_v51, %v380_v50  ;;  %v383_v54 = vsel %vm381_vm8, %v380_v50, %v378_v51 }
 0x164   : > { %v386_v57 = vmul.f32 %v384_v45, %v383_v54  ;;  %v387_v58 = vmul.f32 %v385_v46, %v382_v53 }
 0x165   : > { %538 = vmatpush.bf16.msra.mxu0 %v517_v55 }
 0x166   : > { %388 = vst [vmem:[#allocation2 + $0x18] sm:$0xf] %v386_v57  ;;  %551 = vmatpush.bf16.msra.mxu1 %v518_v59 }
 0x167   : > { %389 = vst [vmem:[#allocation2 + $0x10] sm:$0xf] %v387_v58 }
 0x16d   : > { %v507_v36 = vld [vmem:[#allocation2 + $0x18] sm:$0xff] }
 0x16e   : > { %v515_v60 = vpack.c.bf16 %v507_v36, %v505_v35  ;;  %v508_v62 = vld [vmem:[#allocation2 + $0x10] sm:$0xff] }
 0x16f   : > { %v516_v63 = vpack.c.bf16 %v508_v62, %v506_v61 }
 0x170   : > { %539 = vmatpush.bf16.msra.mxu0 %v515_v60 }
 0x171   : > { %552 = vmatpush.bf16.msra.mxu1 %v516_v63 }
 0x173   : > { %693 = vmatmul.msk.bf16.vlgmr.msra.gmra.mxu0 %vm521_vm9, %v303_v0 }
 0x174   : > { %694 = vmatmul.msk.bf16.vlgmr.msra.gmra.mxu1 %vm521_vm9, %v303_v0 }
 0x1f0   : > { %v541_v1 = vpop.f32.mrf.mxu0 }
 0x1f1   : > { %v554_v2 = vpop.f32.mrf.mxu1  ;;  %v564_v3 = vmul.f32 %v541_v1, %v541_v1 }
 0x1f2   : > { %v558_v4 = vpack.c.bf16 %v554_v2, %v541_v1  ;;  %v560_v5 = vadd.f32 %v554_v2, %v541_v1  ;;  %v565_v6 = vmul.f32 %v554_v2, %v554_v2 }
 0x1f4   : > { %559 = vst [vmem:[%s289_s11] sm:$0xff] %v558_v4  ;;  %561 = vadd.xlane.f32.xlu0 %v560_v5  ;;  %v566_v7 = vadd.f32 %v565_v6, %v564_v3 }
 0x1f6   : > { %567 = vadd.xlane.f32.xlu1 %v566_v7 }
 0x1f8   : > { %v543_v8 = vpop.f32.mrf.mxu0 }
 0x1f9   : > { %v556_v9 = vpop.f32.mrf.mxu1 }
 0x267   : > { %v562_v10 = vpop.xlane.xlu0 %561 }
 0x268   : > { %v571_v11 = vperm.slane %v562_v10, %v800_v34 }
 0x269   : > { %v568_v12 = vpop.xlane.xlu1 %567 }
 0x26a   : > { %574 = vst.msk [vmem:[%s292_s14] sm:$0x1] %vm573_vm10, %v571_v11  ;;  %v576_v13 = vperm.slane %v568_v12, %v800_v34 }
 0x26c   : > { %578 = vst.msk [vmem:[%s295_s17] sm:$0x1] %vm573_vm10, %v576_v13 }
 0x26d PF: > { %s18_s24 = sadd.s32 1, %s726_s24  }
 0x26e   : > { %p15_p4 = scmp.ge.s32.totalorder %s18_s24, 4  }
 0x270   :  { %17 = sbr.rel (!%p15_p4) target bundleno = 1 (0x1), region = 94 }

</bundles_post_ra>
